<compile_context>
chip_gen: v7x
topology: tpu7x:2x2x1
jax: 0.10.0
libtpu: 0.0.40
codegen_flags: <defaults>
</compile_context>

<pallas_src>
import math

import jax
import jax.numpy as jnp
import numpy as np
from jax.experimental import pallas as pl
from jax.experimental.pallas import tpu as pltpu

# ----------------------- small synthetic ViT config -----------------------
B = 2            # batch
C = 3            # RGB channels
IMG = 16         # image height / width
PATCH = 8        # patch size -> 2x2 = 4 patches
WIDTH = 32       # transformer width
HEADS = 4
HEAD_DIM = WIDTH // HEADS
LAYERS = 2
MLP = 4 * WIDTH          # 128 (one full lane tile)
OUT_DIM = 16             # image projection dim
GRID = IMG // PATCH
NPATCH = GRID * GRID
SEQ = NPATCH + 1         # 5 real tokens
SEQP = 8                 # sequence padded to one sublane tile
CPP = C * PATCH * PATCH  # 192
EPS = 1e-5

# rows of the merged "globals" slab [12, WIDTH]
#   0:SEQP  -> (cls|0) + pos (zero pad rows),  8/9 -> ln_pre g/b,  10/11 -> ln_post g/b
GLOB_ROWS = SEQP + 4


def _ln(x, g, b):
    mu = jnp.mean(x, axis=-1, keepdims=True)
    var = jnp.mean(jnp.square(x - mu), axis=-1, keepdims=True)
    return (x - mu) * jax.lax.rsqrt(var + EPS) * g + b


# ------------------------------ fused Pallas kernel ------------------------------
def vit_kernel(patches_ref, wmisc_ref, glob_ref, vecs_ref, wattn_ref, wfc_ref, wpr_ref,
               o_ref, seq_ref):
    f32 = jnp.float32
    bf16 = jnp.bfloat16
    li = pl.program_id(1)
    scale = 1.0 / math.sqrt(HEAD_DIM)

    glob = glob_ref[...]                                            # [12, W] f32

    # additive key mask for the padded key columns (>= SEQ)
    key_ids = jax.lax.broadcasted_iota(jnp.int32, (SEQP, SEQP), 1)
    key_mask = jnp.where(key_ids < SEQ, 0.0, -1e9).astype(f32)

    # -------- first layer step: patch embed + cls/pos + ln_pre into the carried scratch --------
    @pl.when(li == 0)
    def _():
        pt = patches_ref[0].astype(bf16)                            # [SEQP, CPP]
        w_patch = wmisc_ref[0:CPP, :]                               # [CPP, W] bf16
        x = jnp.dot(pt, w_patch, preferred_element_type=f32)        # [SEQP, W]
        x = x + glob[0:SEQP, :]                                     # + (cls on row0) + pos
        seq_ref[...] = _ln(x, glob[SEQP:SEQP + 1, :], glob[SEQP + 1:SEQP + 2, :])   # ln_pre

    # per-layer small vectors, one [8, 128] row-slab
    vl = vecs_ref[0]
    ln1_g = vl[0:1, :WIDTH]
    ln1_b = vl[1:2, :WIDTH]
    bqkv = vl[2:3, :3 * WIDTH]
    bo = vl[3:4, :WIDTH]
    ln2_g = vl[4:5, :WIDTH]
    ln2_b = vl[5:6, :WIDTH]
    bfc = vl[6:7, :]                                                # full 128 lanes
    bpr = vl[7:8, :WIDTH]

    seq = seq_ref[...]                                              # [SEQP, W] f32 (residual stream)

    # ---------------- attention branch ----------------
    h = _ln(seq, ln1_g, ln1_b).astype(bf16)                         # [SEQP, W]
    w_attn = wattn_ref[0]                                           # [W, 4W] bf16 (qkv | o)
    qkv = jnp.dot(h, w_attn[:, :3 * WIDTH],
                  preferred_element_type=f32) + bqkv                # [SEQP, 3W] one fused dot
    wo = w_attn[:, 3 * WIDTH:]                                      # [W, W] bf16

    attn = jnp.zeros((SEQP, WIDTH), f32)
    for hi in range(HEADS):                                         # static head loop (in-vreg slices)
        qh = qkv[:, hi * HEAD_DIM:(hi + 1) * HEAD_DIM].astype(bf16)
        kh = qkv[:, WIDTH + hi * HEAD_DIM:WIDTH + (hi + 1) * HEAD_DIM].astype(bf16)
        vh = qkv[:, 2 * WIDTH + hi * HEAD_DIM:2 * WIDTH + (hi + 1) * HEAD_DIM].astype(bf16)

        s = jax.lax.dot_general(qh, kh, (((1,), (1,)), ((), ())),
                                preferred_element_type=f32) * scale + key_mask      # [SEQP, SEQP]
        s = s - jnp.max(s, axis=-1, keepdims=True)
        p = jnp.exp(s)
        p = p * pl.reciprocal(jnp.sum(p, axis=-1, keepdims=True), approx=True)
        oh = jnp.dot(p.astype(bf16), vh, preferred_element_type=f32)                # [SEQP, Hd]
        # accumulate the per-head Wo partial (no lane concat)
        attn = attn + jnp.dot(oh.astype(bf16), wo[hi * HEAD_DIM:(hi + 1) * HEAD_DIM, :],
                              preferred_element_type=f32)
    seq = seq + attn + bo

    # ---------------- MLP branch (QuickGELU) ----------------
    h2 = _ln(seq, ln2_g, ln2_b).astype(bf16)
    ff = jnp.dot(h2, wfc_ref[0], preferred_element_type=f32) + bfc                  # [SEQP, MLP]
    ff = ff * jax.nn.sigmoid(1.702 * ff)
    ff = jnp.dot(ff.astype(bf16), wpr_ref[0], preferred_element_type=f32) + bpr
    seq = seq + ff
    seq_ref[...] = seq                                              # carry to next layer step

    # ---------------- head at the last layer: ln_post + proj ----------------
    @pl.when(li == LAYERS - 1)
    def _():
        cls = _ln(seq, glob[SEQP + 2:SEQP + 3, :], glob[SEQP + 3:SEQP + 4, :]).astype(bf16)
        projT = wmisc_ref[CPP:CPP + OUT_DIM, :]                     # [OUT, W] bf16
        o_ref[0] = jax.lax.dot_general(cls, projT, (((1,), (1,)), ((), ())),
                                       preferred_element_type=jnp.float32)          # [SEQP, OUT]


# ------------------------------ parameters ------------------------------
def init_params(key):
    ks = jax.random.split(key, 8 + LAYERS)
    p = {
        'w_conv': 0.02 * jax.random.normal(ks[0], (WIDTH, C, PATCH, PATCH), jnp.float32),
        'cls': 0.02 * jax.random.normal(ks[1], (WIDTH,), jnp.float32),
        'pos': 0.02 * jax.random.normal(ks[2], (SEQ, WIDTH), jnp.float32),
        'ln_pre_g': jnp.ones((1, WIDTH), jnp.float32),
        'ln_pre_b': jnp.zeros((1, WIDTH), jnp.float32),
        'ln_post_g': jnp.ones((1, WIDTH), jnp.float32),
        'ln_post_b': jnp.zeros((1, WIDTH), jnp.float32),
        'proj': 0.02 * jax.random.normal(ks[3], (WIDTH, OUT_DIM), jnp.float32),
        'blocks': [],
    }
    for li in range(LAYERS):
        bk = jax.random.split(ks[8 + li], 6)
        p['blocks'].append({
            'ln1_g': jnp.ones((1, WIDTH), jnp.float32),
            'ln1_b': jnp.zeros((1, WIDTH), jnp.float32),
            'wqkv': 0.02 * jax.random.normal(bk[0], (WIDTH, 3 * WIDTH), jnp.float32),
            'bqkv': 0.02 * jax.random.normal(bk[1], (1, 3 * WIDTH), jnp.float32),
            'wo': 0.02 * jax.random.normal(bk[2], (WIDTH, WIDTH), jnp.float32),
            'bo': jnp.zeros((1, WIDTH), jnp.float32),
            'ln2_g': jnp.ones((1, WIDTH), jnp.float32),
            'ln2_b': jnp.zeros((1, WIDTH), jnp.float32),
            'wfc': 0.02 * jax.random.normal(bk[3], (WIDTH, MLP), jnp.float32),
            'bfc': 0.02 * jax.random.normal(bk[4], (1, MLP), jnp.float32),
            'wpr': 0.02 * jax.random.normal(bk[5], (MLP, WIDTH), jnp.float32),
            'bpr': jnp.zeros((1, WIDTH), jnp.float32),
        })
    return p


def pack_params(p):
    """Host-side (one-time) packing into the kernel's merged, bf16-weight layout."""
    bf16 = jnp.bfloat16

    # globals [12, W] f32: (cls|0)+pos padded to SEQP rows, then ln_pre g/b, ln_post g/b
    base = jnp.zeros((SEQP, WIDTH), jnp.float32).at[:SEQ].set(p['pos'].at[0].add(p['cls']))
    glob = jnp.concatenate([base, p['ln_pre_g'], p['ln_pre_b'],
                            p['ln_post_g'], p['ln_post_b']], axis=0)            # [12, W]

    # patch-embed weight + proj^T merged into one bf16 slab [CPP+OUT, W]
    wmisc = jnp.concatenate([p['w_conv'].reshape(WIDTH, CPP).T, p['proj'].T],
                            axis=0).astype(bf16)

    def pad128(v):
        v = v.reshape(1, -1)
        return jnp.pad(v, ((0, 0), (0, 128 - v.shape[1])))

    w_attn, wfc, wpr, vecs = [], [], [], []
    for blk in p['blocks']:
        w_attn.append(jnp.concatenate([blk['wqkv'], blk['wo']], axis=1))        # [W, 4W] lane-dense
        wfc.append(blk['wfc'])
        wpr.append(blk['wpr'])
        vecs.append(jnp.concatenate([pad128(blk['ln1_g']), pad128(blk['ln1_b']),
                                     pad128(blk['bqkv']), pad128(blk['bo']),
                                     pad128(blk['ln2_g']), pad128(blk['ln2_b']),
                                     pad128(blk['bfc']), pad128(blk['bpr'])], axis=0))

    return {
        'glob': glob,                                               # [12, W]        f32
        'wmisc': wmisc,                                             # [CPP+OUT, W]   bf16
        'vecs': jnp.stack(vecs).astype(jnp.float32),                # [L, 8, 128]    f32
        'w_attn': jnp.stack(w_attn).astype(bf16),                   # [L, W, 4W]     bf16
        'wfc': jnp.stack(wfc).astype(bf16),                         # [L, W, MLP]    bf16
        'wpr': jnp.stack(wpr).astype(bf16),                         # [L, MLP, W]    bf16
    }


# ------------------------------ encoder forward ------------------------------
def _patchify(images):
    # NCHW -> [B, SEQP, C*p*p] in (c, ph, pw) flatten order; zero row for the cls slot and pad rows.
    x = images.reshape(B, C, GRID, PATCH, GRID, PATCH).transpose(0, 2, 4, 1, 3, 5)
    x = x.reshape(B, NPATCH, CPP)
    cls_row = jnp.zeros((B, 1, CPP), x.dtype)
    pad_rows = jnp.zeros((B, SEQP - SEQ, CPP), x.dtype)
    return jnp.concatenate([cls_row, x, pad_rows], axis=1)          # [B, SEQP, CPP]


def _cost_estimate():
    per_layer = (2 * SEQP * WIDTH * 3 * WIDTH          # fused qkv
                 + 4 * SEQP * SEQP * WIDTH             # scores + p@v (all heads)
                 + 2 * SEQP * WIDTH * WIDTH            # per-head Wo partials (== one WxW)
                 + 4 * SEQP * WIDTH * MLP)             # mlp fc + proj
    flops = B * (2 * SEQP * CPP * WIDTH + LAYERS * per_layer + 2 * SEQP * WIDTH * OUT_DIM)
    trans = B * (LAYERS * (HEADS * SEQP * SEQP + HEADS * SEQP + SEQP * MLP + 2 * SEQP)
                 + 2 * SEQP)
    return int(flops), int(trans)


def encode_image(images, packed):
    patches = _patchify(images)

    def nbytes(a):
        return int(a.size) * a.dtype.itemsize

    flops, trans = _cost_estimate()
    bytes_accessed = (nbytes(patches) + nbytes(packed['wmisc']) + nbytes(packed['glob'])
                      + B * (nbytes(packed['vecs']) + nbytes(packed['w_attn'])
                             + nbytes(packed['wfc']) + nbytes(packed['wpr']))
                      + B * SEQP * OUT_DIM * 4)

    grid_spec = pltpu.PrefetchScalarGridSpec(
        num_scalar_prefetch=0,
        grid=(B, LAYERS),                                           # (parallel batch, streamed layers)
        in_specs=[
            pl.BlockSpec((1, SEQP, CPP), lambda b, l: (b, 0, 0)),           # patches (per batch)
            pl.BlockSpec((CPP + OUT_DIM, WIDTH), lambda b, l: (0, 0)),      # patch W + proj^T
            pl.BlockSpec((GLOB_ROWS, WIDTH), lambda b, l: (0, 0)),          # cls/pos + ln_pre/ln_post
            pl.BlockSpec((1, 8, 128), lambda b, l: (l, 0, 0)),              # per-layer bias/LN vectors
            pl.BlockSpec((1, WIDTH, 4 * WIDTH), lambda b, l: (l, 0, 0)),    # qkv|o weights (streamed)
            pl.BlockSpec((1, WIDTH, MLP), lambda b, l: (l, 0, 0)),          # mlp fc   (streamed)
            pl.BlockSpec((1, MLP, WIDTH), lambda b, l: (l, 0, 0)),          # mlp proj (streamed)
        ],
        out_specs=pl.BlockSpec((1, SEQP, OUT_DIM), lambda b, l: (b, 0, 0)),
        scratch_shapes=[pltpu.VMEM((SEQP, WIDTH), jnp.float32)],            # residual stream carry
    )
    out = pl.pallas_call(
        vit_kernel,
        out_shape=jax.ShapeDtypeStruct((B, SEQP, OUT_DIM), jnp.float32),
        grid_spec=grid_spec,
        compiler_params=pltpu.CompilerParams(
            dimension_semantics=("parallel", "arbitrary"),
            vmem_limit_bytes=64 * 1024 * 1024),
        cost_estimate=pl.CostEstimate(flops=flops, transcendentals=trans,
                                      bytes_accessed=int(bytes_accessed)),
    )(patches, packed['wmisc'], packed['glob'], packed['vecs'],
      packed['w_attn'], packed['wfc'], packed['wpr'])
    return out[:, 0, :]                                             # cls-token row


# ------------------------------ pure-JAX f32 reference ------------------------------
def encode_image_ref(images, p):
    x = images.reshape(B, C, GRID, PATCH, GRID, PATCH).transpose(0, 2, 4, 1, 3, 5)
    patches = x.reshape(B, NPATCH, CPP)
    tok = patches @ p['w_conv'].reshape(WIDTH, -1).T
    seq = jnp.concatenate([jnp.broadcast_to(p['cls'][None, None], (B, 1, WIDTH)), tok], 1)
    seq = seq + p['pos'][None]
    seq = _ln(seq, p['ln_pre_g'], p['ln_pre_b'])
    for blk in p['blocks']:
        h = _ln(seq, blk['ln1_g'], blk['ln1_b'])
        qkv = h @ blk['wqkv'] + blk['bqkv']
        q, k, v = jnp.split(qkv, 3, axis=-1)
        q = q.reshape(B, SEQ, HEADS, HEAD_DIM)
        k = k.reshape(B, SEQ, HEADS, HEAD_DIM)
        v = v.reshape(B, SEQ, HEADS, HEAD_DIM)
        s = jnp.einsum('bqhd,bkhd->bhqk', q, k) / math.sqrt(HEAD_DIM)
        a = jax.nn.softmax(s, axis=-1)
        o = jnp.einsum('bhqk,bkhd->bqhd', a, v).reshape(B, SEQ, WIDTH)
        seq = seq + o @ blk['wo'] + blk['bo']
        h2 = _ln(seq, blk['ln2_g'], blk['ln2_b'])
        ff = h2 @ blk['wfc'] + blk['bfc']
        ff = ff * jax.nn.sigmoid(1.702 * ff)
        seq = seq + ff @ blk['wpr'] + blk['bpr']
    cls_tok = _ln(seq[:, 0, :], p['ln_post_g'], p['ln_post_b'])
    return cls_tok @ p['proj']


if __name__ == "__main__":
    key = jax.random.PRNGKey(0)
    k_img, k_par = jax.random.split(key)
    images = jax.random.normal(k_img, (B, C, IMG, IMG), jnp.float32)   # NCHW
    params = init_params(k_par)
    packed = pack_params(params)

    out = jax.jit(encode_image)(images, packed)
    out = jax.block_until_ready(out)

    ref = encode_image_ref(images, params)
    # bf16-at-the-MXU vs f32 reference -> relaxed tolerance
    np.testing.assert_allclose(np.asarray(out), np.asarray(ref), atol=2e-2, rtol=2e-2)
    assert out.shape == (B, OUT_DIM)
    print("KERNEL_OK")
</pallas_src>

<mosaic_0001>
module attributes {stable_mosaic.version = 11 : i64} {
  func.func @vit_kernel(%arg0: i32, %arg1: i32, %arg2: memref<1x8x192xf32, #tpu.memory_space<vmem>>, %arg3: memref<208x32xbf16, #tpu.memory_space<vmem>>, %arg4: memref<12x32xf32, #tpu.memory_space<vmem>>, %arg5: memref<1x8x128xf32, #tpu.memory_space<vmem>>, %arg6: memref<1x32x128xbf16, #tpu.memory_space<vmem>>, %arg7: memref<1x32x128xbf16, #tpu.memory_space<vmem>>, %arg8: memref<1x128x32xbf16, #tpu.memory_space<vmem>>, %arg9: memref<1x8x16xf32, #tpu.memory_space<vmem>>, %arg10: memref<8x32xf32, #tpu.memory_space<vmem>>) attributes {dimension_semantics = [#tpu.dimension_semantics<parallel>, #tpu.dimension_semantics<arbitrary>], iteration_bounds = array<i64: 2, 2>, scalar_prefetch = 0 : i64, scratch_operands = 1 : i64, tpu.core_type = #tpu.core_type<tc>, window_params = [{transform_indices = @transform_0, window_bounds = array<i64: 1, 8, 192>}, {pipeline_mode = #tpu.pipeline_mode<synchronous>, transform_indices = @transform_1, window_bounds = array<i64: 208, 32>}, {pipeline_mode = #tpu.pipeline_mode<synchronous>, transform_indices = @transform_2, window_bounds = array<i64: 12, 32>}, {transform_indices = @transform_3, window_bounds = array<i64: 1, 8, 128>}, {transform_indices = @transform_4, window_bounds = array<i64: 1, 32, 128>}, {transform_indices = @transform_5, window_bounds = array<i64: 1, 32, 128>}, {transform_indices = @transform_6, window_bounds = array<i64: 1, 128, 32>}, {transform_indices = @transform_7, window_bounds = array<i64: 1, 8, 16>}]} {
    %c0 = arith.constant 0 : index
    %c0_0 = arith.constant 0 : index
    %0 = vector.load %arg4[%c0, %c0_0] : memref<12x32xf32, #tpu.memory_space<vmem>>, vector<12x32xf32>
    %1 = tpu.iota {dimensions = array<i32: 1>} : vector<8x8xi32>
    %c5_i32 = arith.constant 5 : i32
    %2 = vector.broadcast %c5_i32 : i32 to vector<8x8xi32>
    %3 = arith.cmpi slt, %1, %2 : vector<8x8xi32>
    %cst = arith.constant 0.000000e+00 : f32
    %cst_1 = arith.constant -1.000000e+09 : f32
    %4 = vector.broadcast %cst : f32 to vector<8x8xf32>
    %5 = vector.broadcast %cst_1 : f32 to vector<8x8xf32>
    %6 = arith.select %3, %4, %5 : vector<8x8xi1>, vector<8x8xf32>
    %c0_i32 = arith.constant 0 : i32
    %7 = arith.cmpi eq, %arg1, %c0_i32 : i32
    %8 = arith.extui %7 : i1 to i32
    %c0_i32_2 = arith.constant 0 : i32
    %9 = arith.cmpi ne, %8, %c0_i32_2 : i32
    scf.if %9 {
      %c0_60 = arith.constant 0 : index
      %c0_61 = arith.constant 0 : index
      %c0_62 = arith.constant 0 : index
      %206 = vector.load %arg2[%c0_60, %c0_61, %c0_62] : memref<1x8x192xf32, #tpu.memory_space<vmem>>, vector<1x8x192xf32>
      %207 = vector.shape_cast %206 : vector<1x8x192xf32> to vector<8x192xf32>
      %208 = arith.truncf %207 : vector<8x192xf32> to vector<8x192xbf16>
      %c0_63 = arith.constant 0 : index
      %c0_64 = arith.constant 0 : index
      %209 = vector.load %arg3[%c0_63, %c0_64] : memref<208x32xbf16, #tpu.memory_space<vmem>>, vector<192x32xbf16>
      %cst_65 = arith.constant dense<0.000000e+00> : vector<8x32xf32>
      %210 = tpu.matmul %208, %209, %cst_65 {dimension_numbers = #tpu.dot_dimension_numbers<[1], [0], [0], [1], [0, 0, 1, 1], [], []>} : vector<8x192xbf16>, vector<192x32xbf16>, vector<8x32xf32> -> vector<8x32xf32>
      %211 = vector.extract_strided_slice %0 {offsets = [0, 0], sizes = [8, 32], strides = [1, 1]} : vector<12x32xf32> to vector<8x32xf32>
      %212 = arith.addf %210, %211 : vector<8x32xf32>
      %213 = vector.extract_strided_slice %0 {offsets = [8, 0], sizes = [1, 32], strides = [1, 1]} : vector<12x32xf32> to vector<1x32xf32>
      %214 = vector.extract_strided_slice %0 {offsets = [9, 0], sizes = [1, 32], strides = [1, 1]} : vector<12x32xf32> to vector<1x32xf32>
      %cst_66 = arith.constant dense<0.000000e+00> : vector<8xf32>
      %215 = vector.multi_reduction <add>, %212, %cst_66 [1] : vector<8x32xf32> to vector<8xf32>
      %216 = vector.shape_cast %215 : vector<8xf32> to vector<8x1xf32>
      %cst_67 = arith.constant 3.200000e+01 : f32
      %217 = vector.broadcast %cst_67 : f32 to vector<8x1xf32>
      %218 = arith.divf %216, %217 : vector<8x1xf32>
      %219 = vector.broadcast %218 : vector<8x1xf32> to vector<8x32xf32>
      %220 = arith.subf %212, %219 : vector<8x32xf32>
      %221 = arith.mulf %220, %220 : vector<8x32xf32>
      %cst_68 = arith.constant dense<0.000000e+00> : vector<8xf32>
      %222 = vector.multi_reduction <add>, %221, %cst_68 [1] : vector<8x32xf32> to vector<8xf32>
      %223 = vector.shape_cast %222 : vector<8xf32> to vector<8x1xf32>
      %cst_69 = arith.constant 3.200000e+01 : f32
      %224 = vector.broadcast %cst_69 : f32 to vector<8x1xf32>
      %225 = arith.divf %223, %224 : vector<8x1xf32>
      %226 = vector.broadcast %218 : vector<8x1xf32> to vector<8x32xf32>
      %227 = arith.subf %212, %226 : vector<8x32xf32>
      %cst_70 = arith.constant 9.99999974E-6 : f32
      %228 = vector.broadcast %cst_70 : f32 to vector<8x1xf32>
      %229 = arith.addf %225, %228 : vector<8x1xf32>
      %230 = math.rsqrt %229 : vector<8x1xf32>
      %231 = vector.broadcast %230 : vector<8x1xf32> to vector<8x32xf32>
      %232 = arith.mulf %227, %231 : vector<8x32xf32>
      %233 = vector.broadcast %213 : vector<1x32xf32> to vector<8x32xf32>
      %234 = arith.mulf %232, %233 : vector<8x32xf32>
      %235 = vector.broadcast %214 : vector<1x32xf32> to vector<8x32xf32>
      %236 = arith.addf %234, %235 : vector<8x32xf32>
      %c0_71 = arith.constant 0 : index
      %c0_72 = arith.constant 0 : index
      %237 = vector.load %arg10[%c0_71, %c0_72] : memref<8x32xf32, #tpu.memory_space<vmem>>, vector<8x32xf32>
      tpu.vector_store %arg10[%c0_71, %c0_72], %236 {strides = array<i32>} : memref<8x32xf32, #tpu.memory_space<vmem>>, vector<8x32xf32>,
    } else {
    }
    %c0_3 = arith.constant 0 : index
    %c0_4 = arith.constant 0 : index
    %c0_5 = arith.constant 0 : index
    %10 = vector.load %arg5[%c0_3, %c0_4, %c0_5] : memref<1x8x128xf32, #tpu.memory_space<vmem>>, vector<1x8x128xf32>
    %11 = vector.shape_cast %10 : vector<1x8x128xf32> to vector<8x128xf32>
    %12 = vector.extract_strided_slice %11 {offsets = [0, 0], sizes = [1, 32], strides = [1, 1]} : vector<8x128xf32> to vector<1x32xf32>
    %13 = vector.extract_strided_slice %11 {offsets = [1, 0], sizes = [1, 32], strides = [1, 1]} : vector<8x128xf32> to vector<1x32xf32>
    %14 = vector.extract_strided_slice %11 {offsets = [2, 0], sizes = [1, 96], strides = [1, 1]} : vector<8x128xf32> to vector<1x96xf32>
    %15 = vector.extract_strided_slice %11 {offsets = [3, 0], sizes = [1, 32], strides = [1, 1]} : vector<8x128xf32> to vector<1x32xf32>
    %16 = vector.extract_strided_slice %11 {offsets = [4, 0], sizes = [1, 32], strides = [1, 1]} : vector<8x128xf32> to vector<1x32xf32>
    %17 = vector.extract_strided_slice %11 {offsets = [5, 0], sizes = [1, 32], strides = [1, 1]} : vector<8x128xf32> to vector<1x32xf32>
    %18 = vector.extract_strided_slice %11 {offsets = [6, 0], sizes = [1, 128], strides = [1, 1]} : vector<8x128xf32> to vector<1x128xf32>
    %19 = vector.extract_strided_slice %11 {offsets = [7, 0], sizes = [1, 32], strides = [1, 1]} : vector<8x128xf32> to vector<1x32xf32>
    %c0_6 = arith.constant 0 : index
    %c0_7 = arith.constant 0 : index
    %20 = vector.load %arg10[%c0_6, %c0_7] : memref<8x32xf32, #tpu.memory_space<vmem>>, vector<8x32xf32>
    %cst_8 = arith.constant dense<0.000000e+00> : vector<8xf32>
    %21 = vector.multi_reduction <add>, %20, %cst_8 [1] : vector<8x32xf32> to vector<8xf32>
    %22 = vector.shape_cast %21 : vector<8xf32> to vector<8x1xf32>
    %cst_9 = arith.constant 3.200000e+01 : f32
    %23 = vector.broadcast %cst_9 : f32 to vector<8x1xf32>
    %24 = arith.divf %22, %23 : vector<8x1xf32>
    %25 = vector.broadcast %24 : vector<8x1xf32> to vector<8x32xf32>
    %26 = arith.subf %20, %25 : vector<8x32xf32>
    %27 = arith.mulf %26, %26 : vector<8x32xf32>
    %cst_10 = arith.constant dense<0.000000e+00> : vector<8xf32>
    %28 = vector.multi_reduction <add>, %27, %cst_10 [1] : vector<8x32xf32> to vector<8xf32>
    %29 = vector.shape_cast %28 : vector<8xf32> to vector<8x1xf32>
    %cst_11 = arith.constant 3.200000e+01 : f32
    %30 = vector.broadcast %cst_11 : f32 to vector<8x1xf32>
    %31 = arith.divf %29, %30 : vector<8x1xf32>
    %32 = vector.broadcast %24 : vector<8x1xf32> to vector<8x32xf32>
    %33 = arith.subf %20, %32 : vector<8x32xf32>
    %cst_12 = arith.constant 9.99999974E-6 : f32
    %34 = vector.broadcast %cst_12 : f32 to vector<8x1xf32>
    %35 = arith.addf %31, %34 : vector<8x1xf32>
    %36 = math.rsqrt %35 : vector<8x1xf32>
    %37 = vector.broadcast %36 : vector<8x1xf32> to vector<8x32xf32>
    %38 = arith.mulf %33, %37 : vector<8x32xf32>
    %39 = vector.broadcast %12 : vector<1x32xf32> to vector<8x32xf32>
    %40 = arith.mulf %38, %39 : vector<8x32xf32>
    %41 = vector.broadcast %13 : vector<1x32xf32> to vector<8x32xf32>
    %42 = arith.addf %40, %41 : vector<8x32xf32>
    %43 = arith.truncf %42 : vector<8x32xf32> to vector<8x32xbf16>
    %c0_13 = arith.constant 0 : index
    %c0_14 = arith.constant 0 : index
    %c0_15 = arith.constant 0 : index
    %44 = vector.load %arg6[%c0_13, %c0_14, %c0_15] : memref<1x32x128xbf16, #tpu.memory_space<vmem>>, vector<1x32x128xbf16>
    %45 = vector.shape_cast %44 : vector<1x32x128xbf16> to vector<32x128xbf16>
    %46 = vector.extract_strided_slice %45 {offsets = [0, 0], sizes = [32, 96], strides = [1, 1]} : vector<32x128xbf16> to vector<32x96xbf16>
    %cst_16 = arith.constant dense<0.000000e+00> : vector<8x96xf32>
    %47 = tpu.matmul %43, %46, %cst_16 {dimension_numbers = #tpu.dot_dimension_numbers<[1], [0], [0], [1], [0, 0, 1, 1], [], []>} : vector<8x32xbf16>, vector<32x96xbf16>, vector<8x96xf32> -> vector<8x96xf32>
    %48 = vector.broadcast %14 : vector<1x96xf32> to vector<8x96xf32>
    %49 = arith.addf %47, %48 : vector<8x96xf32>
    %50 = vector.extract_strided_slice %45 {offsets = [0, 96], sizes = [32, 32], strides = [1, 1]} : vector<32x128xbf16> to vector<32x32xbf16>
    %cst_17 = arith.constant 0.000000e+00 : f32
    %51 = vector.broadcast %cst_17 : f32 to vector<8x32xf32>
    %52 = vector.extract_strided_slice %49 {offsets = [0, 0], sizes = [8, 8], strides = [1, 1]} : vector<8x96xf32> to vector<8x8xf32>
    %53 = arith.truncf %52 : vector<8x8xf32> to vector<8x8xbf16>
    %54 = vector.extract_strided_slice %49 {offsets = [0, 32], sizes = [8, 8], strides = [1, 1]} : vector<8x96xf32> to vector<8x8xf32>
    %55 = arith.truncf %54 : vector<8x8xf32> to vector<8x8xbf16>
    %56 = vector.extract_strided_slice %49 {offsets = [0, 64], sizes = [8, 8], strides = [1, 1]} : vector<8x96xf32> to vector<8x8xf32>
    %57 = arith.truncf %56 : vector<8x8xf32> to vector<8x8xbf16>
    %cst_18 = arith.constant dense<0.000000e+00> : vector<8x8xf32>
    %58 = tpu.matmul %53, %55, %cst_18 {dimension_numbers = #tpu.dot_dimension_numbers<[1], [1], [0], [0], [0, 0, 1, 0], [], []>} : vector<8x8xbf16>, vector<8x8xbf16>, vector<8x8xf32> -> vector<8x8xf32>
    %cst_19 = arith.constant 0.353553385 : f32
    %59 = vector.broadcast %cst_19 : f32 to vector<8x8xf32>
    %60 = arith.mulf %58, %59 : vector<8x8xf32>
    %61 = arith.addf %60, %6 : vector<8x8xf32>
    %cst_20 = arith.constant dense<0xFF800000> : vector<8xf32>
    %62 = vector.multi_reduction <maximumf>, %61, %cst_20 [1] : vector<8x8xf32> to vector<8xf32>
    %63 = vector.shape_cast %62 : vector<8xf32> to vector<8x1xf32>
    %64 = vector.broadcast %63 : vector<8x1xf32> to vector<8x8xf32>
    %65 = arith.subf %61, %64 : vector<8x8xf32>
    %66 = math.exp %65 : vector<8x8xf32>
    %cst_21 = arith.constant dense<0.000000e+00> : vector<8xf32>
    %67 = vector.multi_reduction <add>, %66, %cst_21 [1] : vector<8x8xf32> to vector<8xf32>
    %68 = vector.shape_cast %67 : vector<8xf32> to vector<8x1xf32>
    %69 = tpu.reciprocal %68 {approx = true} : vector<8x1xf32> -> vector<8x1xf32>
    %70 = vector.broadcast %69 : vector<8x1xf32> to vector<8x8xf32>
    %71 = arith.mulf %66, %70 : vector<8x8xf32>
    %72 = arith.truncf %71 : vector<8x8xf32> to vector<8x8xbf16>
    %cst_22 = arith.constant dense<0.000000e+00> : vector<8x8xf32>
    %73 = tpu.matmul %72, %57, %cst_22 {dimension_numbers = #tpu.dot_dimension_numbers<[1], [0], [0], [1], [0, 0, 1, 1], [], []>} : vector<8x8xbf16>, vector<8x8xbf16>, vector<8x8xf32> -> vector<8x8xf32>
    %74 = arith.truncf %73 : vector<8x8xf32> to vector<8x8xbf16>
    %75 = vector.extract_strided_slice %50 {offsets = [0, 0], sizes = [8, 32], strides = [1, 1]} : vector<32x32xbf16> to vector<8x32xbf16>
    %cst_23 = arith.constant dense<0.000000e+00> : vector<8x32xf32>
    %76 = tpu.matmul %74, %75, %cst_23 {dimension_numbers = #tpu.dot_dimension_numbers<[1], [0], [0], [1], [0, 0, 1, 1], [], []>} : vector<8x8xbf16>, vector<8x32xbf16>, vector<8x32xf32> -> vector<8x32xf32>
    %77 = arith.addf %51, %76 : vector<8x32xf32>
    %78 = vector.extract_strided_slice %49 {offsets = [0, 8], sizes = [8, 8], strides = [1, 1]} : vector<8x96xf32> to vector<8x8xf32>
    %79 = arith.truncf %78 : vector<8x8xf32> to vector<8x8xbf16>
    %80 = vector.extract_strided_slice %49 {offsets = [0, 40], sizes = [8, 8], strides = [1, 1]} : vector<8x96xf32> to vector<8x8xf32>
    %81 = arith.truncf %80 : vector<8x8xf32> to vector<8x8xbf16>
    %82 = vector.extract_strided_slice %49 {offsets = [0, 72], sizes = [8, 8], strides = [1, 1]} : vector<8x96xf32> to vector<8x8xf32>
    %83 = arith.truncf %82 : vector<8x8xf32> to vector<8x8xbf16>
    %cst_24 = arith.constant dense<0.000000e+00> : vector<8x8xf32>
    %84 = tpu.matmul %79, %81, %cst_24 {dimension_numbers = #tpu.dot_dimension_numbers<[1], [1], [0], [0], [0, 0, 1, 0], [], []>} : vector<8x8xbf16>, vector<8x8xbf16>, vector<8x8xf32> -> vector<8x8xf32>
    %cst_25 = arith.constant 0.353553385 : f32
    %85 = vector.broadcast %cst_25 : f32 to vector<8x8xf32>
    %86 = arith.mulf %84, %85 : vector<8x8xf32>
    %87 = arith.addf %86, %6 : vector<8x8xf32>
    %cst_26 = arith.constant dense<0xFF800000> : vector<8xf32>
    %88 = vector.multi_reduction <maximumf>, %87, %cst_26 [1] : vector<8x8xf32> to vector<8xf32>
    %89 = vector.shape_cast %88 : vector<8xf32> to vector<8x1xf32>
    %90 = vector.broadcast %89 : vector<8x1xf32> to vector<8x8xf32>
    %91 = arith.subf %87, %90 : vector<8x8xf32>
    %92 = math.exp %91 : vector<8x8xf32>
    %cst_27 = arith.constant dense<0.000000e+00> : vector<8xf32>
    %93 = vector.multi_reduction <add>, %92, %cst_27 [1] : vector<8x8xf32> to vector<8xf32>
    %94 = vector.shape_cast %93 : vector<8xf32> to vector<8x1xf32>
    %95 = tpu.reciprocal %94 {approx = true} : vector<8x1xf32> -> vector<8x1xf32>
    %96 = vector.broadcast %95 : vector<8x1xf32> to vector<8x8xf32>
    %97 = arith.mulf %92, %96 : vector<8x8xf32>
    %98 = arith.truncf %97 : vector<8x8xf32> to vector<8x8xbf16>
    %cst_28 = arith.constant dense<0.000000e+00> : vector<8x8xf32>
    %99 = tpu.matmul %98, %83, %cst_28 {dimension_numbers = #tpu.dot_dimension_numbers<[1], [0], [0], [1], [0, 0, 1, 1], [], []>} : vector<8x8xbf16>, vector<8x8xbf16>, vector<8x8xf32> -> vector<8x8xf32>
    %100 = arith.truncf %99 : vector<8x8xf32> to vector<8x8xbf16>
    %101 = vector.extract_strided_slice %50 {offsets = [8, 0], sizes = [8, 32], strides = [1, 1]} : vector<32x32xbf16> to vector<8x32xbf16>
    %cst_29 = arith.constant dense<0.000000e+00> : vector<8x32xf32>
    %102 = tpu.matmul %100, %101, %cst_29 {dimension_numbers = #tpu.dot_dimension_numbers<[1], [0], [0], [1], [0, 0, 1, 1], [], []>} : vector<8x8xbf16>, vector<8x32xbf16>, vector<8x32xf32> -> vector<8x32xf32>
    %103 = arith.addf %77, %102 : vector<8x32xf32>
    %104 = vector.extract_strided_slice %49 {offsets = [0, 16], sizes = [8, 8], strides = [1, 1]} : vector<8x96xf32> to vector<8x8xf32>
    %105 = arith.truncf %104 : vector<8x8xf32> to vector<8x8xbf16>
    %106 = vector.extract_strided_slice %49 {offsets = [0, 48], sizes = [8, 8], strides = [1, 1]} : vector<8x96xf32> to vector<8x8xf32>
    %107 = arith.truncf %106 : vector<8x8xf32> to vector<8x8xbf16>
    %108 = vector.extract_strided_slice %49 {offsets = [0, 80], sizes = [8, 8], strides = [1, 1]} : vector<8x96xf32> to vector<8x8xf32>
    %109 = arith.truncf %108 : vector<8x8xf32> to vector<8x8xbf16>
    %cst_30 = arith.constant dense<0.000000e+00> : vector<8x8xf32>
    %110 = tpu.matmul %105, %107, %cst_30 {dimension_numbers = #tpu.dot_dimension_numbers<[1], [1], [0], [0], [0, 0, 1, 0], [], []>} : vector<8x8xbf16>, vector<8x8xbf16>, vector<8x8xf32> -> vector<8x8xf32>
    %cst_31 = arith.constant 0.353553385 : f32
    %111 = vector.broadcast %cst_31 : f32 to vector<8x8xf32>
    %112 = arith.mulf %110, %111 : vector<8x8xf32>
    %113 = arith.addf %112, %6 : vector<8x8xf32>
    %cst_32 = arith.constant dense<0xFF800000> : vector<8xf32>
    %114 = vector.multi_reduction <maximumf>, %113, %cst_32 [1] : vector<8x8xf32> to vector<8xf32>
    %115 = vector.shape_cast %114 : vector<8xf32> to vector<8x1xf32>
    %116 = vector.broadcast %115 : vector<8x1xf32> to vector<8x8xf32>
    %117 = arith.subf %113, %116 : vector<8x8xf32>
    %118 = math.exp %117 : vector<8x8xf32>
    %cst_33 = arith.constant dense<0.000000e+00> : vector<8xf32>
    %119 = vector.multi_reduction <add>, %118, %cst_33 [1] : vector<8x8xf32> to vector<8xf32>
    %120 = vector.shape_cast %119 : vector<8xf32> to vector<8x1xf32>
    %121 = tpu.reciprocal %120 {approx = true} : vector<8x1xf32> -> vector<8x1xf32>
    %122 = vector.broadcast %121 : vector<8x1xf32> to vector<8x8xf32>
    %123 = arith.mulf %118, %122 : vector<8x8xf32>
    %124 = arith.truncf %123 : vector<8x8xf32> to vector<8x8xbf16>
    %cst_34 = arith.constant dense<0.000000e+00> : vector<8x8xf32>
    %125 = tpu.matmul %124, %109, %cst_34 {dimension_numbers = #tpu.dot_dimension_numbers<[1], [0], [0], [1], [0, 0, 1, 1], [], []>} : vector<8x8xbf16>, vector<8x8xbf16>, vector<8x8xf32> -> vector<8x8xf32>
    %126 = arith.truncf %125 : vector<8x8xf32> to vector<8x8xbf16>
    %127 = vector.extract_strided_slice %50 {offsets = [16, 0], sizes = [8, 32], strides = [1, 1]} : vector<32x32xbf16> to vector<8x32xbf16>
    %cst_35 = arith.constant dense<0.000000e+00> : vector<8x32xf32>
    %128 = tpu.matmul %126, %127, %cst_35 {dimension_numbers = #tpu.dot_dimension_numbers<[1], [0], [0], [1], [0, 0, 1, 1], [], []>} : vector<8x8xbf16>, vector<8x32xbf16>, vector<8x32xf32> -> vector<8x32xf32>
    %129 = arith.addf %103, %128 : vector<8x32xf32>
    %130 = vector.extract_strided_slice %49 {offsets = [0, 24], sizes = [8, 8], strides = [1, 1]} : vector<8x96xf32> to vector<8x8xf32>
    %131 = arith.truncf %130 : vector<8x8xf32> to vector<8x8xbf16>
    %132 = vector.extract_strided_slice %49 {offsets = [0, 56], sizes = [8, 8], strides = [1, 1]} : vector<8x96xf32> to vector<8x8xf32>
    %133 = arith.truncf %132 : vector<8x8xf32> to vector<8x8xbf16>
    %134 = vector.extract_strided_slice %49 {offsets = [0, 88], sizes = [8, 8], strides = [1, 1]} : vector<8x96xf32> to vector<8x8xf32>
    %135 = arith.truncf %134 : vector<8x8xf32> to vector<8x8xbf16>
    %cst_36 = arith.constant dense<0.000000e+00> : vector<8x8xf32>
    %136 = tpu.matmul %131, %133, %cst_36 {dimension_numbers = #tpu.dot_dimension_numbers<[1], [1], [0], [0], [0, 0, 1, 0], [], []>} : vector<8x8xbf16>, vector<8x8xbf16>, vector<8x8xf32> -> vector<8x8xf32>
    %cst_37 = arith.constant 0.353553385 : f32
    %137 = vector.broadcast %cst_37 : f32 to vector<8x8xf32>
    %138 = arith.mulf %136, %137 : vector<8x8xf32>
    %139 = arith.addf %138, %6 : vector<8x8xf32>
    %cst_38 = arith.constant dense<0xFF800000> : vector<8xf32>
    %140 = vector.multi_reduction <maximumf>, %139, %cst_38 [1] : vector<8x8xf32> to vector<8xf32>
    %141 = vector.shape_cast %140 : vector<8xf32> to vector<8x1xf32>
    %142 = vector.broadcast %141 : vector<8x1xf32> to vector<8x8xf32>
    %143 = arith.subf %139, %142 : vector<8x8xf32>
    %144 = math.exp %143 : vector<8x8xf32>
    %cst_39 = arith.constant dense<0.000000e+00> : vector<8xf32>
    %145 = vector.multi_reduction <add>, %144, %cst_39 [1] : vector<8x8xf32> to vector<8xf32>
    %146 = vector.shape_cast %145 : vector<8xf32> to vector<8x1xf32>
    %147 = tpu.reciprocal %146 {approx = true} : vector<8x1xf32> -> vector<8x1xf32>
    %148 = vector.broadcast %147 : vector<8x1xf32> to vector<8x8xf32>
    %149 = arith.mulf %144, %148 : vector<8x8xf32>
    %150 = arith.truncf %149 : vector<8x8xf32> to vector<8x8xbf16>
    %cst_40 = arith.constant dense<0.000000e+00> : vector<8x8xf32>
    %151 = tpu.matmul %150, %135, %cst_40 {dimension_numbers = #tpu.dot_dimension_numbers<[1], [0], [0], [1], [0, 0, 1, 1], [], []>} : vector<8x8xbf16>, vector<8x8xbf16>, vector<8x8xf32> -> vector<8x8xf32>
    %152 = arith.truncf %151 : vector<8x8xf32> to vector<8x8xbf16>
    %153 = vector.extract_strided_slice %50 {offsets = [24, 0], sizes = [8, 32], strides = [1, 1]} : vector<32x32xbf16> to vector<8x32xbf16>
    %cst_41 = arith.constant dense<0.000000e+00> : vector<8x32xf32>
    %154 = tpu.matmul %152, %153, %cst_41 {dimension_numbers = #tpu.dot_dimension_numbers<[1], [0], [0], [1], [0, 0, 1, 1], [], []>} : vector<8x8xbf16>, vector<8x32xbf16>, vector<8x32xf32> -> vector<8x32xf32>
    %155 = arith.addf %129, %154 : vector<8x32xf32>
    %156 = arith.addf %20, %155 : vector<8x32xf32>
    %157 = vector.broadcast %15 : vector<1x32xf32> to vector<8x32xf32>
    %158 = arith.addf %156, %157 : vector<8x32xf32>
    %cst_42 = arith.constant dense<0.000000e+00> : vector<8xf32>
    %159 = vector.multi_reduction <add>, %158, %cst_42 [1] : vector<8x32xf32> to vector<8xf32>
    %160 = vector.shape_cast %159 : vector<8xf32> to vector<8x1xf32>
    %cst_43 = arith.constant 3.200000e+01 : f32
    %161 = vector.broadcast %cst_43 : f32 to vector<8x1xf32>
    %162 = arith.divf %160, %161 : vector<8x1xf32>
    %163 = vector.broadcast %162 : vector<8x1xf32> to vector<8x32xf32>
    %164 = arith.subf %158, %163 : vector<8x32xf32>
    %165 = arith.mulf %164, %164 : vector<8x32xf32>
    %cst_44 = arith.constant dense<0.000000e+00> : vector<8xf32>
    %166 = vector.multi_reduction <add>, %165, %cst_44 [1] : vector<8x32xf32> to vector<8xf32>
    %167 = vector.shape_cast %166 : vector<8xf32> to vector<8x1xf32>
    %cst_45 = arith.constant 3.200000e+01 : f32
    %168 = vector.broadcast %cst_45 : f32 to vector<8x1xf32>
    %169 = arith.divf %167, %168 : vector<8x1xf32>
    %170 = vector.broadcast %162 : vector<8x1xf32> to vector<8x32xf32>
    %171 = arith.subf %158, %170 : vector<8x32xf32>
    %cst_46 = arith.constant 9.99999974E-6 : f32
    %172 = vector.broadcast %cst_46 : f32 to vector<8x1xf32>
    %173 = arith.addf %169, %172 : vector<8x1xf32>
    %174 = math.rsqrt %173 : vector<8x1xf32>
    %175 = vector.broadcast %174 : vector<8x1xf32> to vector<8x32xf32>
    %176 = arith.mulf %171, %175 : vector<8x32xf32>
    %177 = vector.broadcast %16 : vector<1x32xf32> to vector<8x32xf32>
    %178 = arith.mulf %176, %177 : vector<8x32xf32>
    %179 = vector.broadcast %17 : vector<1x32xf32> to vector<8x32xf32>
    %180 = arith.addf %178, %179 : vector<8x32xf32>
    %181 = arith.truncf %180 : vector<8x32xf32> to vector<8x32xbf16>
    %c0_47 = arith.constant 0 : index
    %c0_48 = arith.constant 0 : index
    %c0_49 = arith.constant 0 : index
    %182 = vector.load %arg7[%c0_47, %c0_48, %c0_49] : memref<1x32x128xbf16, #tpu.memory_space<vmem>>, vector<1x32x128xbf16>
    %183 = vector.shape_cast %182 : vector<1x32x128xbf16> to vector<32x128xbf16>
    %cst_50 = arith.constant dense<0.000000e+00> : vector<8x128xf32>
    %184 = tpu.matmul %181, %183, %cst_50 {dimension_numbers = #tpu.dot_dimension_numbers<[1], [0], [0], [1], [0, 0, 1, 1], [], []>} : vector<8x32xbf16>, vector<32x128xbf16>, vector<8x128xf32> -> vector<8x128xf32>
    %185 = vector.broadcast %18 : vector<1x128xf32> to vector<8x128xf32>
    %186 = arith.addf %184, %185 : vector<8x128xf32>
    %cst_51 = arith.constant 1.702000e+00 : f32
    %187 = vector.broadcast %cst_51 : f32 to vector<8x128xf32>
    %188 = arith.mulf %187, %186 : vector<8x128xf32>
    %189 = arith.negf %188 : vector<8x128xf32>
    %190 = math.exp %189 : vector<8x128xf32>
    %cst_52 = arith.constant 1.000000e+00 : f32
    %191 = vector.broadcast %cst_52 : f32 to vector<8x128xf32>
    %192 = arith.addf %191, %190 : vector<8x128xf32>
    %193 = arith.divf %191, %192 : vector<8x128xf32>
    %194 = arith.mulf %186, %193 : vector<8x128xf32>
    %195 = arith.truncf %194 : vector<8x128xf32> to vector<8x128xbf16>
    %c0_53 = arith.constant 0 : index
    %c0_54 = arith.constant 0 : index
    %c0_55 = arith.constant 0 : index
    %196 = vector.load %arg8[%c0_53, %c0_54, %c0_55] : memref<1x128x32xbf16, #tpu.memory_space<vmem>>, vector<1x128x32xbf16>
    %197 = vector.shape_cast %196 : vector<1x128x32xbf16> to vector<128x32xbf16>
    %cst_56 = arith.constant dense<0.000000e+00> : vector<8x32xf32>
    %198 = tpu.matmul %195, %197, %cst_56 {dimension_numbers = #tpu.dot_dimension_numbers<[1], [0], [0], [1], [0, 0, 1, 1], [], []>} : vector<8x128xbf16>, vector<128x32xbf16>, vector<8x32xf32> -> vector<8x32xf32>
    %199 = vector.broadcast %19 : vector<1x32xf32> to vector<8x32xf32>
    %200 = arith.addf %198, %199 : vector<8x32xf32>
    %201 = arith.addf %158, %200 : vector<8x32xf32>
    %c0_57 = arith.constant 0 : index
    %c0_58 = arith.constant 0 : index
    %202 = vector.load %arg10[%c0_57, %c0_58] : memref<8x32xf32, #tpu.memory_space<vmem>>, vector<8x32xf32>
    tpu.vector_store %arg10[%c0_57, %c0_58], %201 {strides = array<i32>} : memref<8x32xf32, #tpu.memory_space<vmem>>, vector<8x32xf32>,
    %c1_i32 = arith.constant 1 : i32
    %203 = arith.cmpi eq, %arg1, %c1_i32 : i32
    %204 = arith.extui %203 : i1 to i32
    %c0_i32_59 = arith.constant 0 : i32
    %205 = arith.cmpi ne, %204, %c0_i32_59 : i32
    scf.if %205 {
      %206 = vector.extract_strided_slice %0 {offsets = [10, 0], sizes = [1, 32], strides = [1, 1]} : vector<12x32xf32> to vector<1x32xf32>
      %207 = vector.extract_strided_slice %0 {offsets = [11, 0], sizes = [1, 32], strides = [1, 1]} : vector<12x32xf32> to vector<1x32xf32>
      %cst_60 = arith.constant dense<0.000000e+00> : vector<8xf32>
      %208 = vector.multi_reduction <add>, %201, %cst_60 [1] : vector<8x32xf32> to vector<8xf32>
      %209 = vector.shape_cast %208 : vector<8xf32> to vector<8x1xf32>
      %cst_61 = arith.constant 3.200000e+01 : f32
      %210 = vector.broadcast %cst_61 : f32 to vector<8x1xf32>
      %211 = arith.divf %209, %210 : vector<8x1xf32>
      %212 = vector.broadcast %211 : vector<8x1xf32> to vector<8x32xf32>
      %213 = arith.subf %201, %212 : vector<8x32xf32>
      %214 = arith.mulf %213, %213 : vector<8x32xf32>
      %cst_62 = arith.constant dense<0.000000e+00> : vector<8xf32>
      %215 = vector.multi_reduction <add>, %214, %cst_62 [1] : vector<8x32xf32> to vector<8xf32>
      %216 = vector.shape_cast %215 : vector<8xf32> to vector<8x1xf32>
      %cst_63 = arith.constant 3.200000e+01 : f32
      %217 = vector.broadcast %cst_63 : f32 to vector<8x1xf32>
      %218 = arith.divf %216, %217 : vector<8x1xf32>
      %219 = vector.broadcast %211 : vector<8x1xf32> to vector<8x32xf32>
      %220 = arith.subf %201, %219 : vector<8x32xf32>
      %cst_64 = arith.constant 9.99999974E-6 : f32
      %221 = vector.broadcast %cst_64 : f32 to vector<8x1xf32>
      %222 = arith.addf %218, %221 : vector<8x1xf32>
      %223 = math.rsqrt %222 : vector<8x1xf32>
      %224 = vector.broadcast %223 : vector<8x1xf32> to vector<8x32xf32>
      %225 = arith.mulf %220, %224 : vector<8x32xf32>
      %226 = vector.broadcast %206 : vector<1x32xf32> to vector<8x32xf32>
      %227 = arith.mulf %225, %226 : vector<8x32xf32>
      %228 = vector.broadcast %207 : vector<1x32xf32> to vector<8x32xf32>
      %229 = arith.addf %227, %228 : vector<8x32xf32>
      %230 = arith.truncf %229 : vector<8x32xf32> to vector<8x32xbf16>
      %c192 = arith.constant 192 : index
      %c0_65 = arith.constant 0 : index
      %231 = vector.load %arg3[%c192, %c0_65] : memref<208x32xbf16, #tpu.memory_space<vmem>>, vector<16x32xbf16>
      %cst_66 = arith.constant dense<0.000000e+00> : vector<8x16xf32>
      %232 = tpu.matmul %230, %231, %cst_66 {dimension_numbers = #tpu.dot_dimension_numbers<[1], [1], [0], [0], [0, 0, 1, 0], [], []>} : vector<8x32xbf16>, vector<16x32xbf16>, vector<8x16xf32> -> vector<8x16xf32>
      %c0_67 = arith.constant 0 : index
      %c0_68 = arith.constant 0 : index
      %c0_69 = arith.constant 0 : index
      %233 = vector.load %arg9[%c0_67, %c0_68, %c0_69] : memref<1x8x16xf32, #tpu.memory_space<vmem>>, vector<1x8x16xf32>
      %234 = vector.shape_cast %233 : vector<1x8x16xf32> to vector<8x16xf32>
      %235 = vector.shape_cast %232 : vector<8x16xf32> to vector<1x8x16xf32>
      tpu.vector_store %arg9[%c0_67, %c0_68, %c0_69], %235 {strides = array<i32>} : memref<1x8x16xf32, #tpu.memory_space<vmem>>, vector<1x8x16xf32>,
    } else {
    }
    return
  }
  func.func @transform_0(%arg0: i32, %arg1: i32) -> (i32, i32, i32) {
    %c0_i32 = arith.constant 0 : i32
    %c0_i32_0 = arith.constant 0 : i32
    %c0_i32_1 = arith.constant 0 : i32
    return %arg0, %c0_i32, %c0_i32_0 : i32, i32, i32
  }
  func.func @transform_1(%arg0: i32, %arg1: i32) -> (i32, i32) {
    %c0_i32 = arith.constant 0 : i32
    %c0_i32_0 = arith.constant 0 : i32
    %c0_i32_1 = arith.constant 0 : i32
    return %c0_i32, %c0_i32_0 : i32, i32
  }
  func.func @transform_2(%arg0: i32, %arg1: i32) -> (i32, i32) {
    %c0_i32 = arith.constant 0 : i32
    %c0_i32_0 = arith.constant 0 : i32
    %c0_i32_1 = arith.constant 0 : i32
    return %c0_i32, %c0_i32_0 : i32, i32
  }
  func.func @transform_3(%arg0: i32, %arg1: i32) -> (i32, i32, i32) {
    %c0_i32 = arith.constant 0 : i32
    %c0_i32_0 = arith.constant 0 : i32
    %c0_i32_1 = arith.constant 0 : i32
    return %arg1, %c0_i32, %c0_i32_0 : i32, i32, i32
  }
  func.func @transform_4(%arg0: i32, %arg1: i32) -> (i32, i32, i32) {
    %c0_i32 = arith.constant 0 : i32
    %c0_i32_0 = arith.constant 0 : i32
    %c0_i32_1 = arith.constant 0 : i32
    return %arg1, %c0_i32, %c0_i32_0 : i32, i32, i32
  }
  func.func @transform_5(%arg0: i32, %arg1: i32) -> (i32, i32, i32) {
    %c0_i32 = arith.constant 0 : i32
    %c0_i32_0 = arith.constant 0 : i32
    %c0_i32_1 = arith.constant 0 : i32
    return %arg1, %c0_i32, %c0_i32_0 : i32, i32, i32
  }
  func.func @transform_6(%arg0: i32, %arg1: i32) -> (i32, i32, i32) {
    %c0_i32 = arith.constant 0 : i32
    %c0_i32_0 = arith.constant 0 : i32
    %c0_i32_1 = arith.constant 0 : i32
    return %arg1, %c0_i32, %c0_i32_0 : i32, i32, i32
  }
  func.func @transform_7(%arg0: i32, %arg1: i32) -> (i32, i32, i32) {
    %c0_i32 = arith.constant 0 : i32
    %c0_i32_0 = arith.constant 0 : i32
    %c0_i32_1 = arith.constant 0 : i32
    return %arg0, %c0_i32, %c0_i32_0 : i32, i32, i32
  }
}

</mosaic_0001>

<bundles_post_ra>
// kernel: encode_image.1
= control target key start
LH: loop header
LB: loop body
LE: loop exit
PB: predicated region body
PF: predicated region fallthrough
CT: control target
= control target key end

     0   :  { %s3496_s0 = inlined_call_operand.hbm [shape: f32[2,8,192], index: 0, kind: input, shape index: {}]   ;;  %s3497_s1 = inlined_call_operand.hbm [shape: bf16[208,32], index: 1, kind: input, shape index: {}]   ;;  %s3498_s2 = inlined_call_operand.hbm [shape: f32[12,32], index: 2, kind: input, shape index: {}]   ;;  %s3499_s3 = inlined_call_operand.hbm [shape: f32[2,8,128], index: 3, kind: input, shape index: {}]   ;;  %s3500_s4 = inlined_call_operand.hbm [shape: bf16[2,32,128], index: 4, kind: input, shape index: {}]   ;;  %s3501_s5 = inlined_call_operand.hbm [shape: bf16[2,32,128], index: 5, kind: input, shape index: {}]   ;;  %s3502_s6 = inlined_call_operand.hbm [shape: bf16[2,128,32], index: 6, kind: input, shape index: {}]   ;;  %s3503_s7 = inlined_call_operand.hbm [shape: f32[2,8,16], index: 7, kind: output, shape index: {}]  }
   0x1   :  { %3536 = sst [smem:[#allocation33_spill]] %s3497_s1 }
   0x2   :  { %3537 = sst [smem:[#allocation34_spill]] %s3498_s2 }
   0x3   :  { %3538 = sst [smem:[#allocation35_spill]] %s3499_s3 }
   0x4   :  { %3539 = sst [smem:[#allocation36_spill]] %s3501_s5 }
   0x5   :  { %3540 = sst [smem:[#allocation37_spill]] %s3502_s6 }
   0x6   :  { %3541 = sst [smem:[#allocation38_spill]] %s3503_s7 }
   0x7   :  { %12 = vsyncpa [#allocation4], 0 }
   0x8   :  { %14 = vsyncpa [#allocation4 + $0x1], 0 }
   0x9   :  { %15 = vsyncpa [#allocation7], 0 }
   0xa   :  { %16 = vsyncpa [#allocation10], 0 }
   0xb   :  { %18 = vsyncpa [#allocation10 + $0x1], 0 }
   0xc   :  { %19 = vsyncpa [#allocation13], 0 }
   0xd   :  { %21 = vsyncpa [#allocation13 + $0x1], 0 }
   0xe   :  { %22 = vsyncpa [#allocation5], 0 }
   0xf   :  { %24 = vsyncpa [#allocation5 + $0x1], 0  ;;  %s2780_s24 = smov 0   ;;  %s2782_s25 = smov 0  }
  0x10   :  { %s2784_s26 = smov 0   ;;  %s2786_s27 = smov 0  }
  0x11   :  { %s2788_s28 = smov 0   ;;  %s2790_s29 = smov 0  }
  0x12   :  { %s2792_s30 = smov 0   ;;  %s2794_s8 = smov 0  }
  0x13   :  { %s2796_s9 = smov 0   ;;  %s2798_s10 = smov 0  }
  0x14   :  { %s2800_s11 = smov 0  }
  0x15 LB: > { %3542 = sst [smem:[#allocation21_spill]] %s2672_s25  ;;  %s2836_s12 = sadd.s32 4294967295, %s2708_s11   ;;  %s2708_s11 = sphi %s2800_s11, %s30_s11   ;;  %s2704_s10 = sphi %s2798_s10, %s3610_s10   ;;  %s2700_s9 = sphi %s2796_s9, %s3615_s9   ;;  %s2696_s8 = sphi %s2794_s8, %s3608_s8   ;;  %s2692_s30 = sphi %s2792_s30, %s3614_s30   ;;  %s2688_s29 = sphi %s2790_s29, %s3613_s29   ;;  %s2684_s28 = sphi %s2788_s28, %s3612_s28   ;;  %s2680_s27 = sphi %s2786_s27, %s3611_s27   ;;  %s2676_s26 = sphi %s2784_s26, %s3607_s26   ;;  %s2672_s25 = sphi %s2782_s25, %s3606_s25   ;;  %s2668_s24 = sphi %s2780_s24, %s3605_s24  }
  0x16   : > { %3543 = sst [smem:[#allocation22_spill]] %s2676_s26  ;;  %p1908_p0 = scmp.ge.s32.totalorder %s2708_s11, 1 }
  0x17   : > { %3544 = sst [smem:[#allocation23_spill]] %s2680_s27  ;;  %p3504_p1 = scmp.eq.s32.totalorder %s2836_s12, 0 }
  0x18   : > { %3545 = sst [smem:[#allocation24_spill]] %s2692_s30  ;;  %p245_p2 = scmp.lt.s32.totalorder %s2708_s11, 5 }
  0x19   : > { %3546 = sst [smem:[#allocation25_spill]] %s2696_s8  ;;  %s2710_s14 = smov [#allocation6]  }
  0x1a   : > { %3547 = sst [smem:[#allocation26_spill]] %s2704_s10  ;;  %p2841_p3 = pnand %p1908_p0, %p245_p2 }
  0x1b   : > { %s257_s15 = sshll.u32 %s2710_s14, 4  ;;  %s3551_s1 = sld [smem:[#allocation33_spill]]  ;;  %s258_s15 = int_to_ptr.vmem [resolvable:$true] %s257_s15 }
  0x1c   : > { %s3548_s13 = scalar_select %p2841_p3, 1, 0 }
  0x1d   : > { %p2166_p4 = pneg %p2841_p3 }
  0x1e   : > { %3549 = sst [smem:[#allocation27_spill]] %s3548_s13 }
  0x1f   : > { %p2849_p5 = pnand %p2166_p4, %p3504_p1 }
  0x21   : > { %s3550_s16 = scalar_select %p2849_p5, 1, 0 }
  0x22   : > { %s2368_s19 = scalar_lea.hbm %s3551_s1, 1664  ;;  %p3515_p7 = pneg %p2849_p5 }
  0x23   : > { %p2369_p6 = scmp.ne.s32.totalorder %s3551_s1, %s2368_s19  ;;  %p2375_p10 = scmp.lt.u32.totalorder %s2368_s19, %s3551_s1 }
  0x25   : > { %p2371_p8 = pnand %p3515_p7, %p2369_p6 }
  0x27   : > { %p2372_p9 = pneg %p2371_p8 }
  0x29   : > { %p2377_p11 = pnand %p2375_p10, %p2372_p9 }
  0x2b   : > { %2380 = shalt.err (!%p2377_p11)
}
  0x2c   : > { %s2381_s14 = scalar_lea.vmem %s258_s15, 1664  ;;  %p2389_p2 = scmp.lt.s32.totalorder %s258_s15, %s258_s15 }
  0x2d   : > { %p2382_p12 = scmp.ne.s32.totalorder %s258_s15, %s2381_s14  ;;  %p2390_p4 = scmp.lt.s32.totalorder %s2381_s14, %s2381_s14 }
  0x2f   : > { %p2384_p13 = pnand %p2382_p12, %p3515_p7  ;;  %p2391_p1 = por %p2390_p4, %p2389_p2 }
  0x31   : > { %p2385_p0 = pneg %p2384_p13 }
  0x33   : > { %p2392_p3 = pnand %p2391_p1, %p2385_p0 }
  0x35   : > { %2395 = shalt.err (!%p2392_p3)
}
  0x36   : > { %s3506_s17 = smov 64   ;;  %s3508_s18 = smov 4  }
  0x37   : > { %2169 = dma.hbm_to_vmem [thread:$0]  (!%p2849_p5), %s3551_s1, 1664, %s258_s15, [#allocation7], %s3506_s17, %s3506_s17, %s3508_s18  }
  0x38   : > { %s39_s21 = sadd.s32 1, %s2700_s9  ;;  %p3514_p3 = scmp.eq.s32.totalorder %s2708_s11, 0 }
  0x39   : > { %p2879_p1 = scmp.ge.s32.totalorder %s39_s21, 2  ;;  %s117_s23 = sadd.s32 1, %s2676_s26 }
  0x3a   : > { %p124_p6 = scmp.ne.s32.totalorder %s2676_s26, %s2672_s25  ;;  %p130_p9 = scmp.ne.s32.totalorder %s2672_s25, %s2668_s24 }
  0x3b   : > { %s3552_s22 = scalar_select %p2879_p1, 1, 0 }
  0x3c   : > { %s3617_s21 = smov (%p2879_p1, %s39_s21), 0  ;;  %p2893_p8 = por %p124_p6, %p3514_p3 }
  0x3d   : > { %3553 = sst [smem:[#allocation28_spill]] %s3617_s21  ;;  %s114_s15 = ssub.s32 %s2700_s9, %s3617_s21 }
  0x3e   : > { %p3513_p10 = scmp.lt.s32.totalorder %s2708_s11, 4  ;;  %p115_p11 = scmp.eq.s32.totalorder %s114_s15, 0 }
  0x3f   : > { %p3555_p12 = scmp.eq.s32.totalorder %s2836_s12, 0  ;;  %s2910_s17 = sand.u32 1, %s2676_s26  }
  0x40   : > { %s2913_s18 = scalar_select %p115_p11, %s2676_s26, %s117_s23  }
  0x41   : > { %p2904_p13 = por %p130_p9, %p3555_p12  ;;  %s1915_s1 = sshll.u32 %s2910_s17, 3 }
  0x42   : > { %3558 = sst [smem:[#allocation30_spill]] %s2913_s18  ;;  %s1916_s7 = sshll.u32 %s2700_s9, 7 }
  0x43   : > { %s3556_s19 = scalar_select %p2904_p13, 1, 0 }
  0x44   : > { %s3559_s3 = sld [smem:[#allocation35_spill]]  ;;  %s307_s15 = scalar_lea.vmem [#allocation9], %s1915_s1 }
  0x45   : > { %3557 = sst [smem:[#allocation29_spill]] %s3556_s19  ;;  %s314_s30 = sshll.u32 %s307_s15, 4  ;;  %s2922_s30 = int_to_ptr.vmem [resolvable:$true] %s314_s30 }
  0x46   : > { %p2928_p0 = pnand %p3513_p10, %p2893_p8  ;;  %s3561_s18 = sand.u32 1, %s2708_s11  }
  0x47   : > { %s2935_s8 = scalar_lea.sflag [#allocation10], %s3561_s18 }
  0x48   : > { %s3560_s23 = scalar_select %p2928_p0, 1, 0 }
  0x49   : > { %p2941_p4 = pneg %p2928_p0 }
  0x4a   : > { %s2920_s21 = scalar_lea.hbm %s3559_s3, %s1916_s7  ;;  %s2401_s15 = scalar_lea.hbm %s3559_s3, 256 }
  0x4b   : > { %s2396_s7 = scalar_lea.hbm %s2920_s21, 128  ;;  %p2402_p8 = scmp.lt.u32.totalorder %s2920_s21, %s3559_s3 }
  0x4c   : > { %p2397_p2 = scmp.ne.s32.totalorder %s2920_s21, %s2396_s7  ;;  %p2403_p11 = scmp.lt.u32.totalorder %s2401_s15, %s2396_s7 }
  0x4d   : > { %s3562_s24 = scalar_select %p2941_p4, 1, 0 }
  0x4e   : > { %p2399_p6 = pnand %p2941_p4, %p2397_p2  ;;  %p2404_p12 = por %p2403_p11, %p2402_p8 }
  0x4f   : > { %p2405_p10 = scmp.lt.u32.totalorder %s2396_s7, %s2920_s21 }
  0x50   : > { %p2400_p9 = pneg %p2399_p6 }
  0x51   : > { %p2406_p3 = por %p2405_p10, %p2404_p12 }
  0x53   : > { %p2407_p7 = pnand %p2406_p3, %p2400_p9 }
  0x55   : > { %2410 = shalt.err (!%p2407_p7)
}
  0x56   : > { %s2411_s18 = scalar_lea.vmem %s2922_s30, 128  ;;  %s2713_s1 = smov [#allocation9]  }
  0x57   : > { %p2412_p2 = scmp.ne.s32.totalorder %s2922_s30, %s2411_s18  ;;  %s2416_s14 = sshll.u32 %s2713_s1, 4  ;;  %s2417_s14 = int_to_ptr.vmem [resolvable:$false] %s2416_s14 }
  0x58   : > { %s2418_s26 = scalar_lea.vmem %s2417_s14, 256  ;;  %p2419_p1 = scmp.lt.s32.totalorder %s2922_s30, %s2417_s14 }
  0x59   : > { %p2414_p6 = pnand %p2412_p2, %p2941_p4  ;;  %p2420_p5 = scmp.lt.s32.totalorder %s2418_s26, %s2411_s18 }
  0x5b   : > { %p2415_p13 = pneg %p2414_p6  ;;  %p2421_p8 = por %p2420_p5, %p2419_p1 }
  0x5d   : > { %p2422_p11 = pnand %p2421_p8, %p2415_p13 }
  0x5f   : > { %2425 = shalt.err (!%p2422_p11)
}
  0x60   : > { %2179 = dma.hbm_to_vmem [thread:$0]  (!%p2928_p0), %s2920_s21, 128, %s2922_s30, %s2935_s8  }
  0x61   : > { %s3563_s20 = sshll.u32 %s2910_s17, 4  ;;  %s1923_s1 = sshll.u32 %s2910_s17, 6 }
  0x62   : > { %s325_s7 = scalar_lea.vmem [#allocation11], %s3563_s20  ;;  %s367_s18 = scalar_lea.vmem [#allocation14], %s1923_s1 }
  0x63   : > { %s332_s15 = sshll.u32 %s325_s7, 4  ;;  %s374_s14 = sshll.u32 %s367_s18, 4  ;;  %s2968_s15 = int_to_ptr.vmem [resolvable:$true] %s332_s15  ;;  %s2971_s14 = int_to_ptr.vmem [resolvable:$true] %s374_s14 }
  0x64   : > { %s1988_s26 = sshll.u32 %s2700_s9, 8  ;;  %3564 = sst [smem:[#allocation31_spill]] %s2971_s14 }
  0x65   : > { %s2976_s25 = scalar_lea.hbm %s3500_s4, %s1988_s26  ;;  %s3565_s5 = sld [smem:[#allocation36_spill]] }
  0x66   : > { %s346_s7 = scalar_lea.vmem [#allocation12], %s3563_s20  ;;  %s2714_s18 = smov [#allocation8]  }
  0x67   : > { %s353_s1 = sshll.u32 %s346_s7, 4  ;;  %s2987_s14 = sshll.u32 %s2714_s18, 4  ;;  %s2985_s1 = int_to_ptr.vmem [resolvable:$true] %s353_s1  ;;  %s271_s14 = int_to_ptr.vmem [resolvable:$true] %s2987_s14 }
  0x68   : > { %s3566_s3 = sand.u32 1, %s2708_s11  }
  0x69   : > { %s2991_s19 = scalar_lea.sflag [#allocation13], %s3566_s3 }
  0x6b   : > { %s2981_s21 = scalar_lea.hbm %s3565_s5, %s1988_s26  ;;  %s2431_s26 = scalar_lea.hbm %s3565_s5, 512 }
  0x6c   : > { %s2426_s6 = scalar_lea.hbm %s2981_s21, 256  ;;  %p2432_p3 = scmp.lt.u32.totalorder %s2981_s21, %s3565_s5 }
  0x6d   : > { %p2427_p5 = scmp.ne.s32.totalorder %s2981_s21, %s2426_s6  ;;  %p2433_p10 = scmp.lt.u32.totalorder %s2431_s26, %s2426_s6 }
  0x6e   : > { %p2435_p9 = scmp.lt.u32.totalorder %s2426_s6, %s2981_s21 }
  0x6f   : > { %p2429_p7 = pnand %p2427_p5, %p2941_p4  ;;  %p2434_p13 = por %p2433_p10, %p2432_p3 }
  0x71   : > { %p2430_p1 = pneg %p2429_p7  ;;  %p2436_p12 = por %p2435_p9, %p2434_p13 }
  0x73   : > { %p2437_p2 = pnand %p2436_p12, %p2430_p1 }
  0x75   : > { %2440 = shalt.err (!%p2437_p2)
}
  0x76   : > { %s2441_s7 = scalar_lea.vmem %s2985_s1, 256  ;;  %s2715_s18 = smov [#allocation12]  }
  0x77   : > { %p2442_p6 = scmp.ne.s32.totalorder %s2985_s1, %s2441_s7  ;;  %s2446_s3 = sshll.u32 %s2715_s18, 4  ;;  %s2447_s3 = int_to_ptr.vmem [resolvable:$false] %s2446_s3 }
  0x78   : > { %s2448_s13 = scalar_lea.vmem %s2447_s3, 512  ;;  %p2449_p5 = scmp.lt.s32.totalorder %s2985_s1, %s2447_s3 }
  0x79   : > { %p2444_p8 = pnand %p2442_p6, %p2941_p4  ;;  %p2450_p7 = scmp.lt.s32.totalorder %s2448_s13, %s2441_s7 }
  0x7b   : > { %p2445_p11 = pneg %p2444_p8  ;;  %p2451_p3 = por %p2450_p7, %p2449_p5 }
  0x7d   : > { %p2452_p10 = pnand %p2451_p3, %p2445_p11 }
  0x7f   : > { %2455 = shalt.err (!%p2452_p10)
}
  0x80   : > { %s3567_s6 = smov 4   ;;  %s3568_s17 = smov 64  }
  0x81   : > { %2185 = dma.hbm_to_vmem [thread:$0]  (!%p2928_p0), %s2981_s21, 256, %s2985_s1, %s2991_s19, %s3568_s17, %s3568_s17, %s3567_s6  }
  0x82   : > { %s3569_s2 = sld [smem:[#allocation34_spill]]  ;;  %p3570_p13 = scmp.ne.s32.totalorder %s3550_s16, 0 }
  0x84   : > { %p3571_p9 = pneg %p3570_p13 }
  0x88   : > { %s2456_s20 = scalar_lea.hbm %s3569_s2, 256 }
  0x89   : > { %p2457_p1 = scmp.ne.s32.totalorder %s3569_s2, %s2456_s20  ;;  %p2463_p6 = scmp.lt.u32.totalorder %s2456_s20, %s3569_s2 }
  0x8b   : > { %p2459_p12 = pnand %p2457_p1, %p3571_p9 }
  0x8d   : > { %p2460_p2 = pneg %p2459_p12 }
  0x8f   : > { %p2465_p8 = pnand %p2463_p6, %p2460_p2 }
  0x91   : > { %2468 = shalt.err (!%p2465_p8)
}
  0x92   : > { %s2469_s21 = scalar_lea.vmem %s271_s14, 256  ;;  %p3572_p5 = pmov %p3571_p9 }
  0x93   : > { %p2470_p11 = scmp.ne.s32.totalorder %s271_s14, %s2469_s21  ;;  %p2477_p10 = scmp.lt.s32.totalorder %s271_s14, %s271_s14 }
  0x94   : > { %p2478_p0 = scmp.lt.s32.totalorder %s2469_s21, %s2469_s21 }
  0x95   : > { %p2472_p7 = pnand %p2470_p11, %p3572_p5 }
  0x96   : > { %p2479_p4 = por %p2478_p0, %p2477_p10 }
  0x97   : > { %p2473_p3 = pneg %p2472_p7 }
  0x99   : > { %p2480_p1 = pnand %p2479_p4, %p2473_p3 }
  0x9b   : > { %2483 = shalt.err (!%p2480_p1)
}
  0x9c   : > { %s2716_s1 = smov 128   ;;  %s2717_s26 = smov 8  }
  0x9d   : > { %2172 = dma.hbm_to_vmem [thread:$0]  (!%p3570_p13), %s3569_s2, 256, %s271_s14, [#allocation7], %s2716_s1, %s2716_s1, %s2717_s26  }
  0x9e   : > { %s1907_s7 = sadd.s32 4294967294, %s2708_s11   ;;  %s42_s18 = sadd.s32 1, %s2704_s10 }
  0x9f   : > { %s49_s3 = sadd.s32 1, %s2688_s29  ;;  %p3573_p0 = scmp.ne.s32.totalorder %s3552_s22, 0 }
  0xa0   : > { %p56_p4 = scmp.ne.s32.totalorder %s2688_s29, %s2684_s28  ;;  %p62_p9 = scmp.ne.s32.totalorder %s2684_s28, %s2680_s27 }
  0xa1   : > { %s3619_s18 = smov (!%p3573_p0, %s42_s18), %s2704_s10  ;;  %p232_p2 = scmp.eq.s32.totalorder %s2836_s12, 3 }
  0xa2   : > { %p44_p12 = scmp.ge.s32.totalorder %s3619_s18, 2  ;;  %p3574_p6 = scmp.eq.s32.totalorder %s2708_s11, 0 }
  0xa3   : > { %p3576_p11 = scmp.eq.s32.totalorder %s2836_s12, 0  ;;  %p3064_p5 = por %p232_p2, %p56_p4 }
  0xa4   : > { %p3052_p8 = por %p3574_p6, %p56_p4  ;;  %s3621_s18 = smov (%p44_p12, %s3619_s18), 0 }
  0xa5   : > { %p3058_p13 = por %p3576_p11, %p62_p9  ;;  %3578 = sst [smem:[#allocation32_spill]] %s3621_s18 }
  0xa6   : > { %s3579_s22 = scalar_select %p3064_p5, 1, 0 }
  0xa7   : > { %s3577_s14 = scalar_select %p3058_p13, 1, 0 }
  0xa8   : > { %p238_p7 = scmp.eq.s32.totalorder %s1907_s7, 3  ;;  %s46_s13 = ssub.s32 %s2704_s10, %s3621_s18 }
  0xa9   : > { %s3532_s21 = sand.u32 1, %s2688_s29   ;;  %p47_p3 = scmp.eq.s32.totalorder %s46_s13, 0 }
  0xaa   : > { %p3071_p10 = por %p238_p7, %p62_p9  ;;  %s1912_s26 = sshll.u32 %s3532_s21, 4 }
  0xab   : > { %s3078_s30 = scalar_select %p47_p3, %s2688_s29, %s49_s3  }
  0xac   : > { %s3580_s1 = scalar_select %p3071_p10, 1, 0 }
  0xad   : > { %s1987_s20 = sshll.u32 %s2704_s10, 8  ;;  %s288_s7 = scalar_lea.vmem [#allocation3], %s1912_s26 }
  0xae   : > { %s3084_s27 = scalar_lea.hbm %s3496_s0, %s1987_s20  ;;  %s296_s18 = sshll.u32 %s288_s7, 4  ;;  %s3086_s18 = int_to_ptr.vmem [resolvable:$true] %s296_s18 }
  0xaf   : > { %p3581_p1 = scmp.lt.s32.totalorder %s2708_s11, 4  ;;  %s2484_s21 = scalar_lea.hbm %s2976_s25, 256 }
  0xb0   : > { %p2485_p4 = scmp.ne.s32.totalorder %s2976_s25, %s2484_s21  ;;  %p3583_p9 = scmp.ne.s32.totalorder %s3562_s24, 0 }
  0xb1   : > { %p3092_p0 = pnand %p3581_p1, %p3052_p8  ;;  %s2489_s2 = scalar_lea.hbm %s3500_s4, 512 }
  0xb2   : > { %p2487_p12 = pnand %p2485_p4, %p3583_p9  ;;  %p2490_p6 = scmp.lt.u32.totalorder %s2976_s25, %s3500_s4 }
  0xb3   : > { %p2491_p11 = scmp.lt.u32.totalorder %s2489_s2, %s2484_s21  ;;  %p2493_p3 = scmp.lt.u32.totalorder %s2484_s21, %s2976_s25 }
  0xb4   : > { %p2488_p2 = pneg %p2487_p12 }
  0xb5   : > { %p2492_p7 = por %p2491_p11, %p2490_p6 }
  0xb7   : > { %p2494_p8 = por %p2493_p3, %p2492_p7 }
  0xb9   : > { %p2495_p1 = pnand %p2494_p8, %p2488_p2 }
  0xbb   : > { %2498 = shalt.err (!%p2495_p1)
}
  0xbc   : > { %s2499_s16 = scalar_lea.vmem %s2968_s15, 256  ;;  %s2718_s10 = smov [#allocation11]  }
  0xbd   : > { %p2500_p4 = scmp.ne.s32.totalorder %s2968_s15, %s2499_s16  ;;  %s2504_s20 = sshll.u32 %s2718_s10, 4  ;;  %s2505_s20 = int_to_ptr.vmem [resolvable:$false] %s2504_s20 }
  0xbe   : > { %s2506_s7 = scalar_lea.vmem %s2505_s20, 512  ;;  %p2507_p5 = scmp.lt.s32.totalorder %s2968_s15, %s2505_s20 }
  0xbf   : > { %p2502_p12 = pnand %p2500_p4, %p3583_p9  ;;  %p2508_p13 = scmp.lt.s32.totalorder %s2506_s7, %s2499_s16 }
  0xc1   : > { %p2503_p10 = pneg %p2502_p12  ;;  %p2509_p6 = por %p2508_p13, %p2507_p5 }
  0xc3   : > { %p2510_p11 = pnand %p2509_p6, %p2503_p10 }
  0xc5   : > { %2513 = shalt.err (!%p2510_p11)
}
  0xc6   : > { %p3584_p2 = scmp.ne.s32.totalorder %s3560_s23, 0  ;;  %s1990_s21 = sshll.u32 %s2700_s9, 10 }
  0xc7   : > { %s3585_s3 = sand.u32 1, %s2688_s29   ;;  %s2514_s5 = scalar_lea.hbm %s3084_s27, 256 }
  0xc8   : > { %2182 = dma.hbm_to_vmem [thread:$0]  (!%p3584_p2), %s2976_s25, 256, %s2968_s15, %s2935_s8, %s3568_s17, %s3568_s17, %s3567_s6  }
  0xc9   : > { %s285_s2 = scalar_lea.sflag [#allocation4], %s3585_s3  ;;  %p2515_p13 = scmp.ne.s32.totalorder %s3084_s27, %s2514_s5 }
  0xca   : > { %p2516_p5 = pneg %p3092_p0  ;;  %s2519_s10 = scalar_lea.hbm %s3496_s0, 512 }
  0xcb   : > { %p2520_p3 = scmp.lt.u32.totalorder %s3084_s27, %s3496_s0  ;;  %p2521_p8 = scmp.lt.u32.totalorder %s2519_s10, %s2514_s5 }
  0xcc   : > { %p2517_p10 = pnand %p2516_p5, %p2515_p13  ;;  %p2523_p4 = scmp.lt.u32.totalorder %s2514_s5, %s3084_s27 }
  0xcd   : > { %p2522_p1 = por %p2521_p8, %p2520_p3 }
  0xce   : > { %p2518_p7 = pneg %p2517_p10 }
  0xcf   : > { %p2524_p12 = por %p2523_p4, %p2522_p1 }
  0xd1   : > { %p2525_p6 = pnand %p2524_p12, %p2518_p7 }
  0xd3   : > { %2528 = shalt.err (!%p2525_p6)
}
  0xd4   : > { %s2529_s25 = scalar_lea.vmem %s3086_s18, 256  ;;  %s2719_s8 = smov [#allocation3]  }
  0xd5   : > { %p2530_p11 = scmp.ne.s32.totalorder %s3086_s18, %s2529_s25  ;;  %s2534_s15 = sshll.u32 %s2719_s8, 4  ;;  %s2535_s15 = int_to_ptr.vmem [resolvable:$false] %s2534_s15 }
  0xd6   : > { %s2536_s3 = scalar_lea.vmem %s2535_s15, 512  ;;  %p2537_p2 = scmp.lt.s32.totalorder %s3086_s18, %s2535_s15 }
  0xd7   : > { %p2532_p13 = pnand %p2530_p11, %p2516_p5  ;;  %p2538_p3 = scmp.lt.s32.totalorder %s2536_s3, %s2529_s25 }
  0xd9   : > { %p2533_p10 = pneg %p2532_p13  ;;  %p2539_p8 = por %p2538_p3, %p2537_p2 }
  0xdb   : > { %p2540_p1 = pnand %p2539_p8, %p2533_p10 }
  0xdd   : > { %2543 = shalt.err (!%p2540_p1)
}
  0xde   : > { %2176 = dma.hbm_to_vmem [thread:$0]  (!%p3092_p0), %s3084_s27, 256, %s3086_s18, %s285_s2  }
  0xdf   : > { %s3586_s16 = sld [smem:[#allocation37_spill]] }
  0xe5   : > { %s3154_s10 = scalar_lea.hbm %s3586_s16, %s1990_s21  ;;  %s2549_s25 = scalar_lea.hbm %s3586_s16, 2048 }
  0xe6   : > { %s2544_s20 = scalar_lea.hbm %s3154_s10, 1024  ;;  %p2550_p0 = scmp.lt.u32.totalorder %s3154_s10, %s3586_s16 }
  0xe7   : > { %p2545_p2 = scmp.ne.s32.totalorder %s3154_s10, %s2544_s20  ;;  %p2551_p4 = scmp.lt.u32.totalorder %s2549_s25, %s2544_s20 }
  0xe8   : > { %p2553_p6 = scmp.lt.u32.totalorder %s2544_s20, %s3154_s10 }
  0xe9   : > { %p2547_p5 = pnand %p2545_p2, %p3583_p9  ;;  %p2552_p12 = por %p2551_p4, %p2550_p0 }
  0xeb   : > { %p2548_p7 = pneg %p2547_p5  ;;  %p2554_p11 = por %p2553_p6, %p2552_p12 }
  0xed   : > { %p2555_p13 = pnand %p2554_p11, %p2548_p7 }
  0xef   : > { %2558 = shalt.err (!%p2555_p13)
}
  0xf0   : > { %s3587_s21 = sld [smem:[#allocation31_spill]]  ;;  %s2720_s8 = smov [#allocation14]  }
  0xf1   : > { %s2564_s15 = sshll.u32 %s2720_s8, 4  ;;  %s2565_s15 = int_to_ptr.vmem [resolvable:$false] %s2564_s15 }
  0xf2   : > { %s2566_s3 = scalar_lea.vmem %s2565_s15, 2048 }
  0xf6   : > { %s2559_s2 = scalar_lea.vmem %s3587_s21, 1024  ;;  %p2567_p1 = scmp.lt.s32.totalorder %s3587_s21, %s2565_s15 }
  0xf7   : > { %p2560_p10 = scmp.ne.s32.totalorder %s3587_s21, %s2559_s2  ;;  %p2568_p2 = scmp.lt.s32.totalorder %s2566_s3, %s2559_s2 }
  0xf9   : > { %p2562_p3 = pnand %p2560_p10, %p3583_p9  ;;  %p2569_p5 = por %p2568_p2, %p2567_p1 }
  0xfb   : > { %p2563_p8 = pneg %p2562_p3 }
  0xfd   : > { %p2570_p0 = pnand %p2569_p5, %p2563_p8 }
  0xff   : > { %2573 = shalt.err (!%p2570_p0)
}
 0x100   : > { %p3588_p7 = scmp.ne.s32.totalorder %s3560_s23, 0  ;;  %s3589_s24 = sld [smem:[#allocation27_spill]] }
 0x102   : > { %2188 = dma.hbm_to_vmem [thread:$0]  (!%p3588_p7), %s3154_s10, 1024, %s3587_s21, %s2991_s19, %s3568_s17, %s3568_s17, %s3567_s6  }
 0x106   : > { %p3590_p9 = scmp.ne.s32.totalorder %s3589_s24, 0 }
 0x107   : > { %s3184_s5 = sand.u32 (!%p3590_p9), 1, %s2684_s28   ;;  %p3591_p4 = scmp.ne.s32.totalorder (!%p3590_p9), %s3577_s14, 0 }
 0x108   : > { %386 = sbr.rel (%p3590_p9) target bundleno = 5667 (0x1623), region = 48  ;;  %s1927_s26 = sshll.u32 (!%p3590_p9), %s3184_s5, 4 }
 0x109   : > { %s389_s20 = scalar_lea.sflag (!%p3590_p9), [#allocation4], %s3184_s5  ;;  %s3188_s13 = scalar_lea.vmem (!%p3590_p9), [#allocation3], %s1927_s26 }
 0x10f   : > { %2647 = dma.done.wait (%p3591_p4), %s389_s20, 256  }
 0x110   : > { %2649 = vsyncadd (%p3591_p4), %s389_s20, 4294967040  ;;  %p3592_p12 = scmp.eq.s32.totalorder %s2836_s12, 0 }
 0x112   : > { %2651 = dma.done.wait (%p3592_p12), [#allocation7], 1920   ;;  %p3593_p6 = pmov %p3592_p12 }
 0x113   : > { %s3594_s23 = sld [smem:[#allocation21_spill]]  ;;  %s3595_s19 = sld [smem:[#allocation29_spill]] }
 0x114   : > { %2653 = vsyncadd (%p3593_p6), [#allocation7], 4294965376  ;;  %s405_s6 = sand.u32 1, %s2836_s12  }
 0x115   : > { %s406_s7 = scalar_lea.sflag [#allocation10], %s405_s6 }
 0x119   : > { %s407_s17 = sand.u32 1, %s3594_s23   ;;  %p3596_p11 = scmp.ne.s32.totalorder %s3595_s19, 0 }
 0x11a   : > { %s1930_s10 = sshll.u32 %s407_s17, 3 }
 0x11b   : > { %s3200_s25 = scalar_lea.vmem [#allocation9], %s1930_s10 }
 0x11c   : > { %2655 = dma.done.wait (%p3596_p11), %s406_s7, 384  }
 0x11d   : > { %2657 = vsyncadd (%p3596_p11), %s406_s7, 4294966912  ;;  %s1931_s14 = sshll.u32 %s407_s17, 4  ;;  %s424_s18 = scalar_lea.sflag [#allocation13], %s405_s6 }
 0x11e   : > { %s3206_s27 = scalar_lea.vmem [#allocation11], %s1931_s14  ;;  %s3208_s21 = scalar_lea.vmem [#allocation12], %s1931_s14 }
 0x11f   : > { %2659 = dma.done.wait (%p3596_p11), %s424_s18, 1280  }
 0x120   : > { %2661 = vsyncadd (%p3596_p11), %s424_s18, 4294966016  ;;  %s1933_s12 = sshll.u32 %s407_s17, 6  ;;  %s1934_s2 = sshll.u32 %s3184_s5, 3  ;;  %v490_v0 = vlaneseq  ;;  %v2721_v2 = vmov -1e+09   ;;  %v488_v4 = vld [vmem:[#allocation8] sm:$0xff] }
 0x121   : > { %v3218_v5 = vld [vmem:[#allocation8 + $0x8] sm:$0xf]  ;;  %s3220_s8 = scalar_lea.vmem [#allocation14], %s1933_s12  ;;  %s3222_s15 = scalar_lea.vmem [#allocation15], %s1934_s2 }
 0x122   : > { %v491_v1 = vand.u32 127, %v490_v0  ;;  %s3597_s3 = sld [smem:[#allocation24_spill]] }
 0x124   : > { %vm492_vm0 = vcmp.lt.s32.totalorder %v491_v1, 5 }
 0x125   : > { %v3216_v3 = vsel %vm492_vm0, 0.0, %v2721_v2 }
 0x128   : > { %p1935_p13 = scmp.ne.s32.totalorder %s3597_s3, 0 }
 0x129   : > { %v2311_v6 = vld [vmem:[#allocation6] sm:$0xff] (!%p1935_p13)   ;;  %v2722_v7 = vmov (!%p1935_p13), 0   ;;  %v2312_v8 = vld [vmem:[#allocation6 + $0x8] sm:$0xff] (!%p1935_p13)   ;;  %v2313_v9 = vld [vmem:[#allocation6 + $0x10] sm:$0xff] (!%p1935_p13)   ;;  %vm598_vm1 = vcmask (!%p1935_p13), 523264   ;;  %vm642_vm2 = vcmask (!%p1935_p13), 261120  }
 0x12a   : > { %497 = sbr.rel (%p1935_p13) target bundleno = 874 (0x36a), region = 80  ;;  %602 = vmatprep.subr.bf16.mxu0 (!%p1935_p13), %v2722_v7  ;;  %v2314_v10 = vld [vmem:[#allocation6 + $0x18] sm:$0xff] (!%p1935_p13)   ;;  %v2315_v13 = vld [vmem:[#allocation6 + $0x20] sm:$0xff] (!%p1935_p13)   ;;  %v2316_v14 = vld [vmem:[#allocation6 + $0x28] sm:$0xff] (!%p1935_p13)   ;;  %v658_v37 = vshrl.u32 (!%p1935_p13), %v490_v0, 7 }
 0x12b   : > { %603 = vmatpush1.bf16.msra.mxu0 (!%p1935_p13), %v2311_v6  ;;  %v499_v11 = vld [vmem:[%s3188_s13 + $0x8] sm:$0xff] (!%p1935_p13)  ;;  %v2317_v15 = vld [vmem:[#allocation6 + $0x30] sm:$0xff] (!%p1935_p13)   ;;  %v2319_v17 = vld [vmem:[#allocation6 + $0x40] sm:$0xff] (!%p1935_p13)  }
 0x12c   : > { %604 = vmatprep.subr.bf16.mxu0 (!%p1935_p13), %v2722_v7  ;;  %v501_v12 = vpack.c.bf16 (!%p1935_p13), %v499_v11, %v499_v11  ;;  %v2318_v16 = vld [vmem:[#allocation6 + $0x38] sm:$0xff] (!%p1935_p13)   ;;  %v2320_v18 = vld [vmem:[#allocation6 + $0x48] sm:$0xff] (!%p1935_p13)   ;;  %v2321_v19 = vld [vmem:[#allocation6 + $0x50] sm:$0xff] (!%p1935_p13)   ;;  %v659_v38 = vsub.s32 (!%p1935_p13), 0, %v658_v37  ;;  %v664_v39 = vsub.s32 (!%p1935_p13), 1, %v658_v37 }
 0x12d   : > { %v2322_v20 = vld [vmem:[#allocation6 + $0x58] sm:$0xff] (!%p1935_p13)   ;;  %v498_v21 = vld [vmem:[%s3188_s13] sm:$0xff] (!%p1935_p13) }
 0x12e   : > { %1948 = vmatprep.mubr.msk.bf16.mxu0 (!%p1935_p13), %vm598_vm1, %v501_v12  ;;  %v500_v22 = vpack.c.bf16 (!%p1935_p13), %v498_v21, %v498_v21  ;;  %v660_v40 = vrot.slane (!%p1935_p13), %v3218_v5, %v659_v38  ;;  %v665_v42 = vrot.slane (!%p1935_p13), %v3218_v5, %v664_v39 }
 0x12f   : > { %605 = vmatpush1.bf16.msra.mxu0 (!%p1935_p13), %v2312_v8 }
 0x130   : > { %606 = vmatprep.subr.bf16.mxu0 (!%p1935_p13), %v2722_v7 }
 0x133   : > { %607 = vmatpush1.bf16.msra.mxu0 %v2313_v9 }
 0x134   : > { %608 = vmatprep.subr.bf16.mxu0 %v2722_v7 }
 0x137   : > { %609 = vmatpush1.bf16.msra.mxu0 %v2314_v10 }
 0x138   : > { %610 = vmatprep.subr.bf16.mxu0 %v2722_v7 }
 0x13b   : > { %611 = vmatpush1.bf16.msra.mxu0 %v2315_v13 }
 0x13c   : > { %612 = vmatprep.subr.bf16.mxu0 %v2722_v7 }
 0x13f   : > { %613 = vmatpush1.bf16.msra.mxu0 %v2316_v14 }
 0x140   : > { %614 = vmatprep.subr.bf16.mxu0 %v2722_v7 }
 0x143   : > { %615 = vmatpush1.bf16.msra.mxu0 %v2317_v15 }
 0x144   : > { %616 = vmatprep.subr.bf16.mxu0 %v2722_v7 }
 0x147   : > { %617 = vmatpush1.bf16.msra.mxu0 %v2318_v16 }
 0x148   : > { %618 = vmatprep.subr.bf16.mxu0 %v2722_v7 }
 0x14b   : > { %619 = vmatpush1.bf16.msra.mxu0 %v2319_v17 }
 0x14c   : > { %620 = vmatprep.subr.bf16.mxu0 %v2722_v7 }
 0x14f   : > { %621 = vmatpush1.bf16.msra.mxu0 %v2320_v18 }
 0x150   : > { %622 = vmatprep.subr.bf16.mxu0 %v2722_v7 }
 0x153   : > { %623 = vmatpush1.bf16.msra.mxu0 %v2321_v19 }
 0x154   : > { %624 = vmatprep.subr.bf16.mxu0 %v2722_v7 }
 0x157   : > { %625 = vmatpush1.bf16.msra.mxu0 %v2322_v20 }
 0x15a   : > { %635 = vmatmul.mubr.bf16.vlgmr.msra.gmra.mrb[0].mxu0 %v500_v22 }
 0x22d   : > { %v636_v23 = vpop.f32.mrb[0].mxu0 }
 0x22e   : > { %v637_v24 = vadd.f32 %v636_v23, %v488_v4  ;;  %v638_v25 = vpop.f32.mrb[1].mxu0 }
 0x22f   : > { %v639_v26 = vpop.f32.mrb[2].mxu0 }
 0x230   : > { %v640_v27 = vpop.f32.mrb[3].mxu0  ;;  %v643_v28 = vsel %vm642_vm2, %v637_v24, 0.0 }
 0x231   : > { %644 = vadd.xlane.f32.xlu0 %v643_v28 }
 0x2be   : > { %v645_v29 = vpop.xlane.xlu0 %644 }
 0x2bf   : > { %v647_v30 = vmul.f32 0.03125, %v645_v29 }
 0x2c1   : > { %v648_v31 = vsub.f32 %v637_v24, %v647_v30 }
 0x2c3   : > { %v649_v32 = vmul.f32 %v648_v31, %v648_v31 }
 0x2c5   : > { %v650_v33 = vsel %vm642_vm2, %v649_v32, 0.0 }
 0x2c6   : > { %651 = vadd.xlane.f32.xlu0 %v650_v33 }
 0x353   : > { %v652_v34 = vpop.xlane.xlu0 %651 }
 0x354   : > { %v653_v35 = vmul.f32 0.03125, %v652_v34 }
 0x356   : > { %v654_v36 = vadd.f32 1e-05, %v653_v35 }
 0x358   : > { %2323 = vrsqrt.f32 %v654_v36 }
 0x362   : > { %v2324_v41 = vpop.eup %2323 }
 0x363   : > { %v656_v43 = vmul.f32 %v2324_v41, %v648_v31 }
 0x365   : > { %v661_v44 = vmul.f32 %v660_v40, %v656_v43 }
 0x367   : > { %v666_v45 = vadd.f32 %v665_v42, %v661_v44 }
 0x369   : > { %667 = vst.msk [vmem:[#allocation2] sm:$0xff] %vm642_vm2, %v666_v45 }
 0x36a PF: > { %vm670_vm3 = vcmask 261120   ;;  %v3240_v53 = vld [vmem:[%s3206_s27] sm:$0xf]  ;;  %v3243_v54 = vld [vmem:[%s3206_s27 + $0x4] sm:$0xf]  ;;  %v2723_v55 = vmov 0.0  }
 0x36b   : > { %2032 = vmatprep.subr.bf16.mxu1 %v2723_v55  ;;  %v1949_v56 = vcombine.low %v3240_v53, %v3243_v54  ;;  %v3249_v57 = vld [vmem:[%s3206_s27 + $0x8] sm:$0xf]  ;;  %v3252_v58 = vld [vmem:[%s3206_s27 + $0xc] sm:$0xf]  ;;  %vm2724_vm4 = vmmov 0   ;;  %2058 = vmatprep.subr.bf16.mxu0 %v2723_v55  ;;  %v3264_v63 = vshrl.u32 %v490_v0, 7 }
 0x36c   : > { %2036 = vmatprep.mubr.msk.bf16.mxu1 %vm2724_vm4, %v2723_v55  ;;  %2060 = vmatprep.mubr.msk.bf16.mxu0 %vm2724_vm4, %v2723_v55  ;;  %v1950_v59 = vcombine.low %v3249_v57, %v3252_v58  ;;  %v3268_v2 = vld [vmem:[%s3200_s25] sm:$0xff]  ;;  %s2725_s24 = smov 64   ;;  %s2726_s26 = smov 96   ;;  %vm763_vm5 = vcmask 64512   ;;  %vm829_vm6 = vcmask 1043456  }
 0x36d   : > { %2033 = vmatpush3.bf16.msra.mxu1 %v1949_v56  ;;  %v687_v1 = vsub.s32 0, %v3264_v63  ;;  %v692_v4 = vsub.s32 1, %v3264_v63  ;;  %v702_v0 = vsub.s32 2, %v3264_v63  ;;  %s2727_s20 = smov 88   ;;  %s2728_s13 = smov 120  }
 0x36e   : > { %2034 = vmatprep.subr.bf16.mxu1 %v2723_v55  ;;  %s2729_s23 = smov 56   ;;  %s2730_s19 = smov 32  }
 0x36f   : > { %v688_v6 = vrot.slane %v3268_v2, %v687_v1  ;;  %v693_v9 = vrot.slane %v3268_v2, %v692_v4  ;;  %v703_v13 = vrot.slane %v3268_v2, %v702_v0  ;;  %s2731_s6 = smov 80   ;;  %s2732_s17 = smov 112  }
 0x370   : > { %v3233_v46 = vld [vmem:[#allocation2] sm:$0xff]  ;;  %s2733_s10 = smov 48   ;;  %s2734_s7 = smov 72  }
 0x371   : > { %v671_v47 = vsel %vm670_vm3, %v3233_v46, 0.0  ;;  %2035 = vmatpush3.bf16.msra.mxu1 %v1950_v59  ;;  %s2735_s25 = smov 104   ;;  %s2736_s14 = smov 40  }
 0x372   : > { %672 = vadd.xlane.f32.xlu0 %v671_v47  ;;  %2040 = vmatprep.subr.bf16.mxu1 %v2723_v55  ;;  %s3598_s27 = sld [smem:[#allocation24_spill]] }
 0x378   : > { %p1980_p10 = scmp.ne.s32.totalorder %s3598_s27, 1 }
 0x379   : > { %vm2738_vm7 = vmmov (!%p1980_p10), 0   ;;  %vm1704_vm8 = vcmask (!%p1980_p10), 130048  }
 0x3ff   : > { %v673_v48 = vpop.xlane.xlu0 %672 }
 0x400   : > { %v675_v49 = vmul.f32 0.03125, %v673_v48 }
 0x402   : > { %v676_v50 = vsub.f32 %v3233_v46, %v675_v49 }
 0x404   : > { %v677_v51 = vmul.f32 %v676_v50, %v676_v50 }
 0x406   : > { %v678_v52 = vsel %vm670_vm3, %v677_v51, 0.0 }
 0x407   : > { %679 = vadd.xlane.f32.xlu0 %v678_v52 }
 0x494   : > { %v680_v60 = vpop.xlane.xlu0 %679 }
 0x495   : > { %v681_v61 = vmul.f32 0.03125, %v680_v60  ;;  %v1956_v60 = vcombine.low %v3243_v54, %v3243_v54 }
 0x497   : > { %v682_v62 = vadd.f32 1e-05, %v681_v61 }
 0x499   : > { %2341 = vrsqrt.f32 %v682_v62 }
 0x4a3   : > { %v2342_v7 = vpop.eup %2341 }
 0x4a4   : > { %v684_v8 = vmul.f32 %v2342_v7, %v676_v50 }
 0x4a6   : > { %v689_v10 = vmul.f32 %v688_v6, %v684_v8 }
 0x4a8   : > { %v694_v11 = vadd.f32 %v693_v9, %v689_v10 }
 0x4aa   : > { %v695_v12 = vpack.c.bf16 %v694_v11, %v694_v11 }
 0x4ac   : > { %2037 = vmatmul.mubr.msk.bf16.vlgmr.msra.gmra.mrb[0].mxu1 %vm670_vm3, %v695_v12 }
 0x4ad   : > { %2042 = vmatprep.mubr.msk.bf16.mxu1 %vm2724_vm4, %v2723_v55 }
 0x57f   : > { %v753_v14 = vpop.f32.mrb[0].mxu1 }
 0x580   : > { %v754_v15 = vadd.f32 %v753_v14, %v703_v13  ;;  %v2038_v16 = vpop.f32.mrb[1].mxu1 }
 0x581   : > { %v756_v17 = vpop.f32.mrb[2].mxu1 }
 0x582   : > { %v3280_v18 = vpack.c.bf16 %v754_v15, %v754_v15  ;;  %v2039_v19 = vpop.f32.mrb[3].mxu1 }
 0x584   : > { %824 = vrot.lane.b32.xlu0 %v3280_v18, %s2725_s24  ;;  %761 = vrot.lane.b32.xlu1 %v3280_v18, %s2726_s26 }
 0x5f6   : > { %v762_v20 = vpop.permute.xlu1 %761  ;;  %v825_v22 = vpop.permute.xlu0 %824 }
 0x5f7   : > { %v768_v21 = vsel %vm763_vm5, %v762_v20, 0  ;;  %v831_v23 = vsel %vm829_vm6, %v825_v22, 0 }
 0x5f8   : > { %2041 = vmatpush3.bf16.xpose.msra.mxu1 %v768_v21 }
 0x5f9   : > { %2046 = vmatprep.subr.bf16.mxu1 %v2723_v55 }
 0x5ff   : > { %2043 = vmatmul.mubr.msk.bf16.vlgmr.msra.gmra.mrb[4].mxu1 %vm763_vm5, %v3280_v18 }
 0x600   : > { %2047 = vmatpush3.bf16.msra.mxu1 %v831_v23  ;;  %2048 = vmatprep.mubr.msk.bf16.mxu1 %vm2724_vm4, %v2723_v55 }
 0x601   : > { %2052 = vmatprep.subr.bf16.mxu1 %v2723_v55 }
 0x6d2   : > { %v804_v24 = vpop.f32.mrb[4].mxu1 }
 0x6d3   : > { %v810_v25 = vmul.f32 0.35355338, %v804_v24  ;;  %v2044_v26 = vpop.f32.mrb[5].mxu1 }
 0x6d4   : > { %v807_v27 = vpop.f32.mrb[6].mxu1 }
 0x6d5   : > { %v811_v28 = vadd.f32 %v810_v25, %v3216_v3  ;;  %v2045_v29 = vpop.f32.mrb[7].mxu1 }
 0x6d7   : > { %v812_v30 = vsel %vm763_vm5, %v811_v28, -inf }
 0x6d8   : > { %813 = vmax.xlane.f32.xlu1 %v812_v30 }
 0x765   : > { %v814_v31 = vpop.xlane.xlu1 %813 }
 0x766   : > { %v815_v32 = vsub.f32 %v811_v28, %v814_v31 }
 0x768   : > { %v816_v33 = vmul.f32 1.442695, %v815_v32 }
 0x76a   : > { %2343 = vpow2.f32 %v816_v33 }
 0x774   : > { %v2344_v34 = vpop.eup %2343 }
 0x775   : > { %v818_v35 = vsel %vm763_vm5, %v2344_v34, 0.0 }
 0x776   : > { %819 = vadd.xlane.f32.xlu0 %v818_v35 }
 0x78c   : > { %876 = vrot.lane.b32.xlu0 %v3280_v18, %s2727_s20 }
 0x790   : > { %874 = vrot.lane.b32.xlu0 %v3280_v18, %s2728_s13 }
 0x803   : > { %v820_v36 = vpop.xlane.xlu0 %819 }
 0x804   : > { %2345 = vrcp.f32 %v820_v36 }
 0x807   : > { %v877_v39 = vpop.permute.xlu0 %876 }
 0x808   : > { %v882_v41 = vsel %vm763_vm5, %v877_v39, 0 }
 0x80b   : > { %v875_v42 = vpop.permute.xlu0 %874 }
 0x80e   : > { %v2346_v37 = vpop.eup %2345 }
 0x80f   : > { %v822_v38 = vmul.f32 %v2346_v37, %v2344_v34  ;;  %v1958_v34 = vcombine.low %v3240_v53, %v3240_v53 }
 0x811   : > { %v823_v40 = vpack.c.bf16 %v822_v38, %v822_v38 }
 0x813   : > { %2049 = vmatmul.mubr.msk.bf16.vlgmr.msra.gmra.mrb[8].mxu1 %vm763_vm5, %v823_v40 }
 0x814   : > { %2053 = vmatpush3.bf16.xpose.msra.mxu1 %v882_v41  ;;  %2054 = vmatprep.mubr.msk.bf16.mxu1 %vm2724_vm4, %v2723_v55 }
 0x815   : > { %2064 = vmatprep.subr.bf16.mxu1 %v2723_v55 }
 0x81b   : > { %2055 = vmatmul.mubr.msk.bf16.vlgmr.msra.gmra.mrb[12].mxu1 %vm763_vm5, %v875_v42 }
 0x81c   : > { %2066 = vmatprep.mubr.msk.bf16.mxu1 %vm2724_vm4, %v2723_v55 }
 0x8e6   : > { %v3305_v43 = vpop.f32.mrb[8].mxu1 }
 0x8e7   : > { %v2050_v44 = vpop.f32.mrb[9].mxu1  ;;  %v873_v53 = vpack.c.bf16 %v3305_v43, %v3305_v43 }
 0x8e8   : > { %v870_v45 = vpop.f32.mrb[10].mxu1 }
 0x8e9   : > { %v2051_v47 = vpop.f32.mrb[11].mxu1 }
 0x8ee   : > { %v918_v48 = vpop.f32.mrb[12].mxu1 }
 0x8ef   : > { %v924_v49 = vmul.f32 0.35355338, %v918_v48  ;;  %v2056_v50 = vpop.f32.mrb[13].mxu1 }
 0x8f0   : > { %v921_v51 = vpop.f32.mrb[14].mxu1 }
 0x8f1   : > { %v925_v52 = vadd.f32 %v924_v49, %v3216_v3  ;;  %v2057_v56 = vpop.f32.mrb[15].mxu1 }
 0x8f3   : > { %v926_v59 = vsel %vm763_vm5, %v925_v52, -inf }
 0x8f4   : > { %927 = vmax.xlane.f32.xlu1 %v926_v59 }
 0x905   : > { %938 = vrot.lane.b32.xlu1 %v3280_v18, %s2729_s23 }
 0x909   : > { %988 = vrot.lane.b32.xlu1 %v1956_v60, %s2730_s19 }
 0x90d   : > { %1087 = vrot.lane.b32.xlu1 %v3280_v18, %s2731_s6 }
 0x911   : > { %1085 = vrot.lane.b32.xlu1 %v3280_v18, %s2732_s17 }
 0x981   : > { %v928_v61 = vpop.xlane.xlu1 %927 }
 0x982   : > { %v929_v62 = vsub.f32 %v925_v52, %v928_v61 }
 0x984   : > { %v930_v1 = vmul.f32 1.442695, %v929_v62 }
 0x985   : > { %v939_v4 = vpop.permute.xlu1 %938 }
 0x986   : > { %2347 = vpow2.f32 %v930_v1  ;;  %v944_v6 = vsel %vm829_vm6, %v939_v4, 0 }
 0x987   : > { %2059 = vmatpush3.bf16.msra.mxu0 %v944_v6 }
 0x988   : > { %2070 = vmatprep.subr.bf16.mxu0 %v2723_v55 }
 0x989   : > { %v989_v54 = vpop.permute.xlu1 %988 }
 0x98a   : > { %v994_v7 = vsel %vm829_vm6, %v989_v54, 0 }
 0x98b   : > { %2065 = vmatpush3.bf16.msra.mxu1 %v994_v7 }
 0x98c   : > { %2076 = vmatprep.subr.bf16.mxu1 %v2723_v55 }
 0x98d   : > { %v1088_v14 = vpop.permute.xlu1 %1087 }
 0x98e   : > { %v1093_v20 = vsel %vm763_vm5, %v1088_v14, 0 }
 0x990   : > { %v2348_v8 = vpop.eup %2347 }
 0x991   : > { %v932_v9 = vsel %vm763_vm5, %v2348_v8, 0.0  ;;  %v1086_v22 = vpop.permute.xlu1 %1085 }
 0x992   : > { %933 = vadd.xlane.f32.xlu0 %v932_v9 }
 0xa1f   : > { %v934_v10 = vpop.xlane.xlu0 %933 }
 0xa20   : > { %2349 = vrcp.f32 %v934_v10 }
 0xa2a   : > { %v2350_v11 = vpop.eup %2349 }
 0xa2b   : > { %v936_v12 = vmul.f32 %v2350_v11, %v2348_v8 }
 0xa2d   : > { %v937_v13 = vpack.c.bf16 %v936_v12, %v936_v12 }
 0xa2f   : > { %2061 = vmatmul.mubr.msk.bf16.vlgmr.msra.gmra.mrb[0].mxu0 %vm763_vm5, %v937_v13  ;;  %v1962_v13 = vcombine.low %v3249_v57, %v3249_v57 }
 0xa30   : > { %2072 = vmatprep.mubr.msk.bf16.mxu0 %vm2724_vm4, %v2723_v55 }
 0xb02   : > { %v980_v15 = vpop.f32.mrb[0].mxu0 }
 0xb03   : > { %v986_v16 = vpack.c.bf16 %v980_v15, %v980_v15  ;;  %v2062_v17 = vpop.f32.mrb[1].mxu0 }
 0xb04   : > { %v983_v19 = vpop.f32.mrb[2].mxu0 }
 0xb05   : > { %v2063_v21 = vpop.f32.mrb[3].mxu0  ;;  %2067 = vmatmul.mubr.msk.bf16.vlgmr.msra.gmra.mrb[16].mxu1 %vm763_vm5, %v986_v16 }
 0xb06   : > { %2077 = vmatpush3.bf16.xpose.msra.mxu1 %v1093_v20  ;;  %2078 = vmatprep.mubr.msk.bf16.mxu1 %vm2724_vm4, %v2723_v55 }
 0xb07   : > { %2088 = vmatprep.subr.bf16.mxu1 %v2723_v55 }
 0xb0d   : > { %2079 = vmatmul.mubr.msk.bf16.vlgmr.msra.gmra.mrb[20].mxu1 %vm763_vm5, %v1086_v22  ;;  %v1966_v22 = vcombine.low %v3252_v58, %v3252_v58 }
 0xb0e   : > { %2090 = vmatprep.mubr.msk.bf16.mxu1 %vm2724_vm4, %v2723_v55 }
 0xbd8   : > { %v1030_v23 = vpop.f32.mrb[16].mxu1 }
 0xbd9   : > { %v2068_v24 = vpop.f32.mrb[17].mxu1 }
 0xbda   : > { %v1033_v25 = vpop.f32.mrb[18].mxu1 }
 0xbdb   : > { %v2069_v26 = vpop.f32.mrb[19].mxu1 }
 0xbe0   : > { %v1129_v27 = vpop.f32.mrb[20].mxu1 }
 0xbe1   : > { %v1135_v28 = vmul.f32 0.35355338, %v1129_v27  ;;  %v2080_v29 = vpop.f32.mrb[21].mxu1 }
 0xbe2   : > { %v1132_v30 = vpop.f32.mrb[22].mxu1 }
 0xbe3   : > { %v1136_v31 = vadd.f32 %v1135_v28, %v3216_v3  ;;  %v2081_v32 = vpop.f32.mrb[23].mxu1 }
 0xbe5   : > { %v1137_v33 = vsel %vm763_vm5, %v1136_v31, -inf }
 0xbe6   : > { %1138 = vmax.xlane.f32.xlu0 %v1137_v33 }
 0xbfc   : > { %1037 = vrot.lane.b32.xlu0 %v1958_v34, %s2730_s19 }
 0xc00   : > { %1149 = vrot.lane.b32.xlu0 %v3280_v18, %s2733_s10 }
 0xc04   : > { %1250 = vrot.lane.b32.xlu0 %v3280_v18, %s2734_s7 }
 0xc08   : > { %1248 = vrot.lane.b32.xlu0 %v3280_v18, %s2735_s25 }
 0xc73   : > { %v1139_v35 = vpop.xlane.xlu0 %1138 }
 0xc74   : > { %v1140_v36 = vsub.f32 %v1136_v31, %v1139_v35 }
 0xc76   : > { %v1141_v37 = vmul.f32 1.442695, %v1140_v36 }
 0xc77   : > { %v1038_v38 = vpop.permute.xlu0 %1037 }
 0xc78   : > { %2351 = vpow2.f32 %v1141_v37  ;;  %v1043_v39 = vsel %vm829_vm6, %v1038_v38, 0  ;;  %v1414_v38 = vsub.s32 3, %v3264_v63 }
 0xc79   : > { %2071 = vmatpush3.bf16.msra.mxu0 %v1043_v39 }
 0xc7a   : > { %2082 = vmatprep.subr.bf16.mxu0 %v2723_v55 }
 0xc7b   : > { %v1150_v40 = vpop.permute.xlu0 %1149 }
 0xc7c   : > { %v1155_v41 = vsel %vm829_vm6, %v1150_v40, 0  ;;  %2073 = vmatmul.mubr.msk.bf16.vlgmr.msra.gmra.mrb[4].mxu0 %vm763_vm5, %v873_v53  ;;  %v1415_v40 = vrot.slane %v3268_v2, %v1414_v38 }
 0xc7d   : > { %2083 = vmatpush3.bf16.msra.mxu0 %v1155_v41  ;;  %2084 = vmatprep.mubr.msk.bf16.mxu0 %vm2724_vm4, %v2723_v55 }
 0xc7e   : > { %2094 = vmatprep.subr.bf16.mxu0 %v2723_v55 }
 0xc7f   : > { %v1251_v48 = vpop.permute.xlu0 %1250 }
 0xc80   : > { %v1256_v50 = vsel %vm763_vm5, %v1251_v48, 0 }
 0xc82   : > { %v2352_v42 = vpop.eup %2351 }
 0xc83   : > { %v1143_v44 = vsel %vm763_vm5, %v2352_v42, 0.0  ;;  %v1249_v51 = vpop.permute.xlu0 %1248 }
 0xc84   : > { %1144 = vadd.xlane.f32.xlu1 %v1143_v44 }
 0xd11   : > { %v1145_v45 = vpop.xlane.xlu1 %1144 }
 0xd12   : > { %2353 = vrcp.f32 %v1145_v45 }
 0xd1c   : > { %v2354_v43 = vpop.eup %2353 }
 0xd1d   : > { %v1147_v47 = vmul.f32 %v2354_v43, %v2352_v42 }
 0xd1f   : > { %v1148_v49 = vpack.c.bf16 %v1147_v47, %v1147_v47 }
 0xd21   : > { %2085 = vmatmul.mubr.msk.bf16.vlgmr.msra.gmra.mrb[8].mxu0 %vm763_vm5, %v1148_v49 }
 0xd22   : > { %2095 = vmatpush3.bf16.xpose.msra.mxu0 %v1256_v50  ;;  %2096 = vmatprep.mubr.msk.bf16.mxu0 %vm2724_vm4, %v2723_v55 }
 0xd23   : > { %2106 = vmatprep.subr.bf16.mxu0 %v2723_v55 }
 0xd29   : > { %2097 = vmatmul.mubr.msk.bf16.vlgmr.msra.gmra.mrb[12].mxu0 %vm763_vm5, %v1249_v51 }
 0xd2a   : > { %2108 = vmatprep.mubr.msk.bf16.mxu0 %vm2724_vm4, %v2723_v55 }
 0xd4f   : > { %v1079_v52 = vpop.f32.mrb[4].mxu0 }
 0xd50   : > { %v1080_v56 = vadd.f32 %v1079_v52, %v1030_v23  ;;  %v2074_v59 = vpop.f32.mrb[5].mxu0 }
 0xd51   : > { %v1082_v60 = vpop.f32.mrb[6].mxu0  ;;  %v2332_v59 = vld [vmem:[%s3208_s21 + $0x8] sm:$0xff]  }
 0xd52   : > { %v2075_v61 = vpop.f32.mrb[7].mxu0 }
 0xdf4   : > { %v1191_v62 = vpop.f32.mrb[8].mxu0 }
 0xdf5   : > { %v2086_v1 = vpop.f32.mrb[9].mxu0 }
 0xdf6   : > { %v1194_v4 = vpop.f32.mrb[10].mxu0  ;;  %v1437_v1 = vsub.s32 5, %v3264_v63 }
 0xdf7   : > { %v2087_v6 = vpop.f32.mrb[11].mxu0 }
 0xdfc   : > { %v1292_v54 = vpop.f32.mrb[12].mxu0 }
 0xdfd   : > { %v1298_v7 = vmul.f32 0.35355338, %v1292_v54  ;;  %v2098_v8 = vpop.f32.mrb[13].mxu0 }
 0xdfe   : > { %v1295_v9 = vpop.f32.mrb[14].mxu0 }
 0xdff   : > { %v1299_v10 = vadd.f32 %v1298_v7, %v3216_v3  ;;  %v2099_v11 = vpop.f32.mrb[15].mxu0  ;;  %v1197_v3 = vpack.c.bf16 %v1191_v62, %v1191_v62  ;;  %v1432_v62 = vsub.s32 4, %v3264_v63  ;;  %v1438_v7 = vrot.slane %v3268_v2, %v1437_v1 }
 0xe00   : > { %v2333_v11 = vld [vmem:[%s3220_s8] sm:$0xff]  }
 0xe01   : > { %v1300_v12 = vsel %vm763_vm5, %v1299_v10, -inf  ;;  %v1433_v4 = vrot.slane %v3268_v2, %v1432_v62 }
 0xe02   : > { %1301 = vmax.xlane.f32.xlu1 %v1300_v12  ;;  %v2334_v12 = vld [vmem:[%s3220_s8 + $0x8] sm:$0xff]  }
 0xe13   : > { %1199 = vrot.lane.b32.xlu1 %v1962_v13, %s2730_s19  ;;  %v2335_v13 = vld [vmem:[%s3220_s8 + $0x10] sm:$0xff]  }
 0xe17   : > { %1312 = vrot.lane.b32.xlu1 %v3280_v18, %s2736_s14 }
 0xe1b   : > { %1362 = vrot.lane.b32.xlu1 %v1966_v22, %s2730_s19 }
 0xe8f   : > { %v1302_v14 = vpop.xlane.xlu1 %1301 }
 0xe90   : > { %v1303_v15 = vsub.f32 %v1299_v10, %v1302_v14  ;;  %v2336_v14 = vld [vmem:[%s3220_s8 + $0x18] sm:$0xff]  }
 0xe92   : > { %v1304_v16 = vmul.f32 1.442695, %v1303_v15  ;;  %v2337_v15 = vld [vmem:[%s3220_s8 + $0x20] sm:$0xff]  }
 0xe93   : > { %v1200_v17 = vpop.permute.xlu1 %1199 }
 0xe94   : > { %2355 = vpow2.f32 %v1304_v16  ;;  %v1205_v19 = vsel %vm829_vm6, %v1200_v17, 0  ;;  %v2338_v16 = vld [vmem:[%s3220_s8 + $0x28] sm:$0xff]   ;;  %v2339_v17 = vld [vmem:[%s3220_s8 + $0x30] sm:$0xff]  }
 0xe95   : > { %2089 = vmatpush3.bf16.msra.mxu1 %v1205_v19  ;;  %v2340_v19 = vld [vmem:[%s3220_s8 + $0x38] sm:$0xff]  }
 0xe96   : > { %2100 = vmatprep.subr.bf16.mxu1 %v2723_v55 }
 0xe97   : > { %v1313_v20 = vpop.permute.xlu1 %1312 }
 0xe98   : > { %v1318_v21 = vsel %vm829_vm6, %v1313_v20, 0  ;;  %2091 = vmatmul.mubr.msk.bf16.vlgmr.msra.gmra.mrb[24].mxu1 %vm763_vm5, %v1197_v3  ;;  %v1447_v3 = vsub.s32 6, %v3264_v63 }
 0xe99   : > { %2101 = vmatpush3.bf16.msra.mxu1 %v1318_v21  ;;  %2102 = vmatprep.mubr.msk.bf16.mxu1 %vm2724_vm4, %v2723_v55 }
 0xe9a   : > { %2112 = vmatprep.subr.bf16.mxu1 %v2723_v55  ;;  %v1448_v20 = vrot.slane %v3268_v2, %v1447_v3 }
 0xe9b   : > { %v1363_v27 = vpop.permute.xlu1 %1362 }
 0xe9c   : > { %v1368_v28 = vsel %vm829_vm6, %v1363_v27, 0 }
 0xe9d   : > { %2107 = vmatpush3.bf16.msra.mxu0 %v1368_v28 }
 0xe9e   : > { %v2356_v57 = vpop.eup %2355  ;;  %2120 = vmatprep.subr.bf16.mxu0 %v2723_v55 }
 0xe9f   : > { %v1306_v18 = vsel %vm763_vm5, %v2356_v57, 0.0 }
 0xea0   : > { %1307 = vadd.xlane.f32.xlu0 %v1306_v18 }
 0xf2d   : > { %v1308_v23 = vpop.xlane.xlu0 %1307 }
 0xf2e   : > { %2357 = vrcp.f32 %v1308_v23 }
 0xf38   : > { %v2358_v24 = vpop.eup %2357 }
 0xf39   : > { %v1310_v25 = vmul.f32 %v2358_v24, %v2356_v57 }
 0xf3b   : > { %v1311_v26 = vpack.c.bf16 %v1310_v25, %v1310_v25 }
 0xf3d   : > { %2103 = vmatmul.mubr.msk.bf16.vlgmr.msra.gmra.mrb[28].mxu1 %vm763_vm5, %v1311_v26 }
 0xf3e   : > { %2116 = vmatprep.mubr.msk.bf16.mxu1 %vm2724_vm4, %v2723_v55 }
 0xf6b   : > { %v1241_v29 = vpop.f32.mrb[24].mxu1 }
 0xf6c   : > { %v1247_v58 = vadd.f32 %v1241_v29, %v1080_v56  ;;  %v2092_v30 = vpop.f32.mrb[25].mxu1  ;;  %v2331_v56 = vld [vmem:[%s3208_s21] sm:$0xff]  }
 0xf6d   : > { %v1244_v31 = vpop.f32.mrb[26].mxu1  ;;  %2113 = vmatpush3.bf16.msra.mxu1 %v2331_v56 }
 0xf6e   : > { %v2093_v32 = vpop.f32.mrb[27].mxu1  ;;  %2114 = vmatprep.subr.bf16.mxu1 %v2723_v55 }
 0xf71   : > { %2115 = vmatpush3.bf16.msra.mxu1 %v2332_v59 }
0x1010   : > { %v1354_v33 = vpop.f32.mrb[28].mxu1 }
0x1011   : > { %v1360_v34 = vpack.c.bf16 %v1354_v33, %v1354_v33  ;;  %v2104_v35 = vpop.f32.mrb[29].mxu1 }
0x1012   : > { %v1357_v36 = vpop.f32.mrb[30].mxu1 }
0x1013   : > { %v2105_v37 = vpop.f32.mrb[31].mxu1  ;;  %2109 = vmatmul.mubr.msk.bf16.vlgmr.msra.gmra.mrb[16].mxu0 %vm763_vm5, %v1360_v34 }
0x1014   : > { %2136 = vmatprep.mubr.msk.bf16.mxu0 %vm2724_vm4, %v2723_v55  ;;  %2121 = vmatpush3.bf16.msra.mxu0 %v2333_v11 }
0x1015   : > { %2122 = vmatprep.subr.bf16.mxu0 %v2723_v55 }
0x1018   : > { %2123 = vmatpush3.bf16.msra.mxu0 %v2334_v12 }
0x1019   : > { %2124 = vmatprep.subr.bf16.mxu0 %v2723_v55 }
0x101c   : > { %2125 = vmatpush3.bf16.msra.mxu0 %v2335_v13 }
0x101d   : > { %2126 = vmatprep.subr.bf16.mxu0 %v2723_v55 }
0x1020   : > { %2127 = vmatpush3.bf16.msra.mxu0 %v2336_v14 }
0x1021   : > { %2128 = vmatprep.subr.bf16.mxu0 %v2723_v55 }
0x1024   : > { %2129 = vmatpush3.bf16.msra.mxu0 %v2337_v15 }
0x1025   : > { %2130 = vmatprep.subr.bf16.mxu0 %v2723_v55 }
0x1028   : > { %2131 = vmatpush3.bf16.msra.mxu0 %v2338_v16 }
0x1029   : > { %2132 = vmatprep.subr.bf16.mxu0 %v2723_v55 }
0x102c   : > { %2133 = vmatpush3.bf16.msra.mxu0 %v2339_v17 }
0x102d   : > { %2134 = vmatprep.subr.bf16.mxu0 %v2723_v55 }
0x1030   : > { %2135 = vmatpush3.bf16.msra.mxu0 %v2340_v19 }
0x10e6   : > { %v1404_v39 = vpop.f32.mrb[16].mxu0 }
0x10e7   : > { %v1410_v53 = vadd.f32 %v1404_v39, %v1247_v58  ;;  %v2110_v41 = vpop.f32.mrb[17].mxu0  ;;  %v1531_v58 = vsub.s32 7, %v3264_v63 }
0x10e8   : > { %v1407_v42 = vpop.f32.mrb[18].mxu0 }
0x10e9   : > { %v1411_v44 = vadd.f32 %v1410_v53, %v3233_v46  ;;  %v2111_v45 = vpop.f32.mrb[19].mxu0  ;;  %v1532_v30 = vrot.slane %v3268_v2, %v1531_v58  ;;  %v2365_v42 = vld [vmem:[#allocation6 + $0x60] sm:$0xff] (!%p1980_p10)  }
0x10ea   : > { %v1662_v45 = vsel (!%p1980_p10), %vm670_vm3, %v2365_v42, 0 }
0x10eb   : > { %v3387_v43 = vadd.f32 %v1415_v40, %v1411_v44  ;;  %v2737_v44 = vmov (!%p1980_p10), 0.0  }
0x10ec   : > { %2140 = vmatprep.subr.bf16.mxu0 (!%p1980_p10), %v2737_v44 }
0x10ed   : > { %v1417_v47 = vsel %vm670_vm3, %v3387_v43, 0.0 }
0x10ee   : > { %1418 = vadd.xlane.f32.xlu1 %v1417_v47 }
0x117b   : > { %v1419_v48 = vpop.xlane.xlu1 %1418 }
0x117c   : > { %v1420_v49 = vmul.f32 0.03125, %v1419_v48 }
0x117e   : > { %v1421_v50 = vsub.f32 %v3387_v43, %v1420_v49  ;;  %v1643_v49 = vrot.slane (!%p1980_p10), %v3218_v5, %v702_v0 }
0x1180   : > { %v1422_v51 = vmul.f32 %v1421_v50, %v1421_v50 }
0x1182   : > { %v1423_v52 = vsel %vm670_vm3, %v1422_v51, 0.0 }
0x1183   : > { %1424 = vadd.xlane.f32.xlu0 %v1423_v52  ;;  %v1648_v52 = vrot.slane (!%p1980_p10), %v3218_v5, %v1414_v38 }
0x1210   : > { %v1425_v46 = vpop.xlane.xlu0 %1424 }
0x1211   : > { %v1426_v60 = vmul.f32 0.03125, %v1425_v46 }
0x1213   : > { %v1427_v61 = vadd.f32 1e-05, %v1426_v60 }
0x1215   : > { %2359 = vrsqrt.f32 %v1427_v61 }
0x121f   : > { %v2360_v6 = vpop.eup %2359 }
0x1220   : > { %v1429_v54 = vmul.f32 %v2360_v6, %v1421_v50 }
0x1222   : > { %v1434_v8 = vmul.f32 %v1433_v4, %v1429_v54 }
0x1224   : > { %v1439_v9 = vadd.f32 %v1438_v7, %v1434_v8 }
0x1226   : > { %v1440_v10 = vpack.c.bf16 %v1439_v9, %v1439_v9 }
0x1228   : > { %2117 = vmatmul.mubr.msk.bf16.vlgmr.msra.gmra.mrb[32].mxu1 %vm670_vm3, %v1440_v10 }
0x12fb   : > { %v1498_v21 = vpop.f32.mrb[32].mxu1 }
0x12fc   : > { %v1499_v57 = vadd.f32 %v1498_v21, %v1448_v20  ;;  %v2118_v18 = vpop.f32.mrb[33].mxu1 }
0x12fd   : > { %v1501_v22 = vpop.f32.mrb[34].mxu1 }
0x12fe   : > { %v1971_v23 = vmul.f32 -1.702, %v1499_v57  ;;  %v2119_v24 = vpop.f32.mrb[35].mxu1 }
0x1300   : > { %v1506_v25 = vmul.f32 1.442695, %v1971_v23 }
0x1302   : > { %2361 = vpow2.f32 %v1506_v25 }
0x130c   : > { %v2362_v26 = vpop.eup %2361 }
0x130d   : > { %v1508_v27 = vadd.f32 1.0, %v2362_v26 }
0x130f   : > { %2363 = vrcp.f32 %v1508_v27 }
0x1319   : > { %v2364_v28 = vpop.eup %2363 }
0x131a   : > { %v1511_v29 = vmul.f32 %v2364_v28, %v1499_v57 }
0x131c   : > { %v1512_v55 = vpack.c.bf16 %v1511_v29, %v1511_v29 }
0x131e   : > { %2137 = vmatmul.mubr.bf16.vlgmr.msra.gmra.mrb[20].mxu0 %v1512_v55 }
0x131f   : > { %2142 = vmatprep.mubr.msk.bf16.mxu0 (!%p1980_p10), %vm2738_vm7, %v2737_v44  ;;  %2141 = vmatpush3.bf16.xpose.msra.mxu0 (!%p1980_p10), %v1662_v45 }
0x13f0   : > { %1626 = sbr.rel (%p1980_p10) target bundleno = 5640 (0x1608), region = 84 }
0x13f1   : > { %v1615_v31 = vpop.f32.mrb[20].mxu0 }
0x13f2   : > { %v1616_v32 = vadd.f32 %v1615_v31, %v1532_v30  ;;  %v2138_v33 = vpop.f32.mrb[21].mxu0 }
0x13f3   : > { %v1618_v34 = vpop.f32.mrb[22].mxu0 }
0x13f4   : > { %v1621_v35 = vadd.f32 %v1616_v32, %v3387_v43  ;;  %v2139_v36 = vpop.f32.mrb[23].mxu0 }
0x13f6   : > { %1622 = vst.msk [vmem:[#allocation2] sm:$0xff] %vm670_vm3, %v1621_v35  ;;  %v1627_v37 = vsel (!%p1980_p10), %vm670_vm3, %v1621_v35, 0.0 }
0x13f7   : > { %1628 = vadd.xlane.f32.xlu0 %v1627_v37 }
0x1484   : > { %v1629_v39 = vpop.xlane.xlu0 %1628 }
0x1485   : > { %v1630_v53 = vmul.f32 0.03125, %v1629_v39 }
0x1487   : > { %v1631_v40 = vsub.f32 %v1621_v35, %v1630_v53 }
0x1489   : > { %v1632_v41 = vmul.f32 %v1631_v40, %v1631_v40 }
0x148b   : > { %v1633_v2 = vsel %vm670_vm3, %v1632_v41, 0.0 }
0x148c   : > { %1634 = vadd.xlane.f32.xlu0 %v1633_v2 }
0x1519   : > { %v1635_v43 = vpop.xlane.xlu0 %1634 }
0x151a   : > { %v1636_v47 = vmul.f32 0.03125, %v1635_v43 }
0x151c   : > { %v1637_v48 = vadd.f32 1e-05, %v1636_v47 }
0x151e   : > { %2366 = vrsqrt.f32 %v1637_v48 }
0x1528   : > { %v2367_v50 = vpop.eup %2366 }
0x1529   : > { %v1639_v51 = vmul.f32 %v2367_v50, %v1631_v40 }
0x152b   : > { %v1644_v56 = vmul.f32 %v1643_v49, %v1639_v51 }
0x152d   : > { %v1649_v59 = vadd.f32 %v1648_v52, %v1644_v56 }
0x152f   : > { %v1650_v46 = vpack.c.bf16 %v1649_v59, %v1649_v59 }
0x1531   : > { %2143 = vmatmul.mubr.msk.bf16.vlgmr.msra.gmra.mrb[0].mxu0 %vm670_vm3, %v1650_v46 }
0x1604   : > { %v1698_v60 = vpop.f32.mrb[0].mxu0 }
0x1605   : > { %1705 = vst.msk [vmem:[%s3222_s15] sm:$0xff] %vm1704_vm8, %v1698_v60  ;;  %v2144_v61 = vpop.f32.mrb[1].mxu0 }
0x1606   : > { %v1701_v62 = vpop.f32.mrb[2].mxu0 }
0x1607   : > { %v2145_v1 = vpop.f32.mrb[3].mxu0 }
0x1608 PF: > { %s3599_s18 = sld [smem:[#allocation25_spill]]  ;;  %s3600_s8 = sld [smem:[#allocation38_spill]] }
0x1609   : > { %s1720_s26 = sshll.u32 %s3222_s15, 4  ;;  %s1707_s20 = scalar_lea.sflag [#allocation5], %s3184_s5  ;;  %s1721_s26 = int_to_ptr.vmem [resolvable:$true] %s1720_s26 }
0x160a   : > { %s2574_s13 = scalar_lea.vmem %s1721_s26, 128  ;;  %p3602_p8 = scmp.ne.s32.totalorder %s3579_s22, 0 }
0x160b   : > { %p2575_p3 = scmp.ne.s32.totalorder %s1721_s26, %s2574_s13  ;;  %s2739_s23 = smov [#allocation15]  }
0x160c   : > { %s2578_s19 = sshll.u32 %s2739_s23, 4  ;;  %s2579_s19 = int_to_ptr.vmem [resolvable:$false] %s2578_s19 }
0x160d   : > { %p2576_p1 = pnand %p2575_p3, %p3602_p8  ;;  %s2580_s6 = scalar_lea.vmem %s2579_s19, 256 }
0x160e   : > { %s1984_s21 = sshll.u32 %s3599_s18, 7  ;;  %s3601_s3 = smov %s3600_s8 }
0x160f   : > { %s3438_s24 = scalar_lea.hbm %s3600_s8, %s1984_s21  ;;  %p2577_p2 = pneg %p2576_p1 }
0x1610   : > { %p2581_p5 = scmp.lt.s32.totalorder %s1721_s26, %s2579_s19  ;;  %p2582_p0 = scmp.lt.s32.totalorder %s2580_s6, %s2574_s13 }
0x1612   : > { %p2583_p7 = por %p2582_p0, %p2581_p5 }
0x1614   : > { %p2584_p9 = pnand %p2583_p7, %p2577_p2 }
0x1616   : > { %2587 = shalt.err (!%p2584_p9)
}
0x1617   : > { %s2588_s5 = scalar_lea.hbm %s3438_s24, 128  ;;  %s2592_s10 = scalar_lea.hbm %s3601_s3, 256 }
0x1618   : > { %p2589_p4 = scmp.ne.s32.totalorder %s3438_s24, %s2588_s5  ;;  %p2593_p11 = scmp.lt.u32.totalorder %s3438_s24, %s3601_s3 }
0x1619   : > { %p2594_p13 = scmp.lt.u32.totalorder %s2592_s10, %s2588_s5  ;;  %p2596_p3 = scmp.lt.u32.totalorder %s2588_s5, %s3438_s24 }
0x161a   : > { %p2590_p12 = pnand %p2589_p4, %p3602_p8 }
0x161b   : > { %p2595_p10 = por %p2594_p13, %p2593_p11 }
0x161c   : > { %p2591_p6 = pneg %p2590_p12 }
0x161d   : > { %p2597_p1 = por %p2596_p3, %p2595_p10 }
0x161f   : > { %p2598_p2 = pnand %p2597_p1, %p2591_p6 }
0x1621   : > { %2601 = shalt.err (!%p2598_p2)
}
0x1622   : > { %2164 = dma.vmem_to_hbm [thread:$0]  (%p3602_p8), %s1721_s26, 128, %s3438_s24, %s1707_s20  }
0x1623 PF: > { %s3603_s14 = sld [smem:[#allocation23_spill]]  ;;  %p2198_p5 = scmp.ge.s32.totalorder %s2708_s11, 2 }
0x1624   : > { %p3604_p0 = scmp.ne.s32.totalorder %s3580_s1, 0 }
0x1626   : > { %p2190_p7 = pnand %p2198_p5, %p3604_p0 }
0x1629   : > { %s1732_s27 = sand.u32 1, %s3603_s14  }
0x162a   : > { %s1733_s18 = scalar_lea.sflag [#allocation5], %s1732_s27 }
0x162b   : > { %2663 = dma.done.wait (!%p2190_p7), %s1733_s18, 128  }
0x162c   : > { %2665 = vsyncadd (!%p2190_p7), %s1733_s18, 4294967168  ;;  %s30_s11 = sadd.s32 1, %s2708_s11   ;;  %s3605_s24 = sld [smem:[#allocation21_spill]] }
0x162d   : > { %p27_p9 = scmp.ge.s32.totalorder %s30_s11, 6   ;;  %s3606_s25 = sld [smem:[#allocation22_spill]] }
0x162e   : > { %s3607_s26 = sld [smem:[#allocation30_spill]]  ;;  %s3608_s8 = sld [smem:[#allocation26_spill]] }
0x162f   : > { %s3609_s22 = sld [smem:[#allocation28_spill]]  ;;  %s3610_s10 = sld [smem:[#allocation32_spill]] }
0x1630   : > { %s3611_s27 = smov %s2684_s28  ;;  %s3612_s28 = smov %s2688_s29 }
0x1631   : > { %s3613_s29 = smov %s3078_s30  ;;  %s3614_s30 = smov %s2700_s9 }
0x1632   :  { %29 = sbr.rel (!%p27_p9) target bundleno = 21 (0x15), region = 157 }
0x1635   : > { %s3615_s9 = smov %s3609_s22 }
0x1639   :  { %1738 = vsyncpa [#allocation4], 1 }
0x163a   :  { %1740 = vsyncpa [#allocation4 + $0x1], 1 }
0x163b   :  { %1741 = vsyncpa [#allocation7], 1 }
0x163c   :  { %1742 = vsyncpa [#allocation10], 1 }
0x163d   :  { %1744 = vsyncpa [#allocation10 + $0x1], 1 }
0x163e   :  { %1745 = vsyncpa [#allocation13], 1 }
0x163f   :  { %1747 = vsyncpa [#allocation13 + $0x1], 1 }
0x1640   :  { %1748 = vsyncpa [#allocation5], 1 }
0x1641   :  { %1750 = vsyncpa [#allocation5 + $0x1], 1 }

</bundles_post_ra>
